<compile_context>
chip_gen: v6e
topology: v6e:2x2x1
jax: 0.10.0
libtpu: 0.0.40
codegen_flags: <defaults>
</compile_context>

<pallas_src>
import functools

import jax
import jax.numpy as jnp
from jax.experimental import pallas as pl
from jax.experimental.pallas import tpu as pltpu

BN_EPS = 1e-5


def _round_up(v, m):
    return ((v + m - 1) // m) * m


# ---------------------------------------------------------------------------
# Pallas kernels
# ---------------------------------------------------------------------------

def _layer_kernel(n_ref, x_ref, w_ref, b_ref, h_ref, sum_ref, sq_ref):
    """One hidden layer in transposed layout.

    x_ref : [F_in,  N_TILE]  activation tile (batch on lanes)
    w_ref : [F_out, F_in]    transposed (possibly BN-folded) weight, resident
    b_ref : [F_out, 1]       f32 bias, resident
    h_ref : [F_out, N_TILE]  tanh output tile
    sum_ref/sq_ref : [1, F_out, 1]  per-tile partial BN statistics (f32),
                     masked so padded batch columns do not contribute.
    """
    w = w_ref[...]
    x = x_ref[...].astype(w.dtype)                       # MXU operand dtype (bf16/f32)
    acc = jnp.dot(w, x, preferred_element_type=jnp.float32)   # f32 accumulation
    h = jnp.tanh(acc + b_ref[...])                       # bias add + tanh in f32 (EUP)
    h_ref[...] = h.astype(h_ref.dtype)

    # Masked per-feature partial batch statistics (sum & sum-of-squares).
    n_tile = h.shape[1]
    col = jax.lax.broadcasted_iota(jnp.int32, (1, n_tile), 1) + pl.program_id(0) * n_tile
    valid = col < n_ref[0]                               # true batch size from SMEM
    hm = jnp.where(valid, h, 0.0)
    sum_ref[0] = jnp.sum(hm, axis=1, keepdims=True)
    sq_ref[0] = jnp.sum(hm * hm, axis=1, keepdims=True)


def _head_kernel(x_ref, w4_ref, b4_ref, wo_ref, bo_ref, out_ref):
    """fc4 (BN3 pre-folded) + tanh + fused out_channel heads, transposed layout."""
    w4 = w4_ref[...]
    x = x_ref[...].astype(w4.dtype)
    h = jnp.tanh(jnp.dot(w4, x, preferred_element_type=jnp.float32) + b4_ref[...])
    y = jnp.dot(wo_ref[...], h.astype(wo_ref.dtype),
                preferred_element_type=jnp.float32) + bo_ref[...]
    out_ref[...] = y.astype(out_ref.dtype)               # [out_channel, N_TILE]


# ---------------------------------------------------------------------------
# pallas_call wrappers (batch-tiled grid, resident parameters)
# ---------------------------------------------------------------------------

def _layer_pallas(xT, wT, b, *, n_true, n_tile, matmul_dtype):
    f_in, n_pad = xT.shape
    f_out = wT.shape[0]
    num_tiles = n_pad // n_tile
    grid_spec = pltpu.PrefetchScalarGridSpec(
        num_scalar_prefetch=1,                           # true batch size (for masking)
        grid=(num_tiles,),
        in_specs=[
            pl.BlockSpec((f_in, n_tile), lambda i, n: (0, i)),   # activation tile
            pl.BlockSpec((f_out, f_in), lambda i, n: (0, 0)),    # weight (resident)
            pl.BlockSpec((f_out, 1), lambda i, n: (0, 0)),       # bias   (resident)
        ],
        out_specs=(
            pl.BlockSpec((f_out, n_tile), lambda i, n: (0, i)),  # lane-dense h tile
            pl.BlockSpec((1, f_out, 1), lambda i, n: (i, 0, 0)), # partial sum
            pl.BlockSpec((1, f_out, 1), lambda i, n: (i, 0, 0)), # partial sumsq
        ),
    )
    return pl.pallas_call(
        _layer_kernel,
        grid_spec=grid_spec,
        out_shape=(
            jax.ShapeDtypeStruct((f_out, n_pad), matmul_dtype),
            jax.ShapeDtypeStruct((num_tiles, f_out, 1), jnp.float32),
            jax.ShapeDtypeStruct((num_tiles, f_out, 1), jnp.float32),
        ),
        compiler_params=pltpu.CompilerParams(dimension_semantics=("parallel",)),
    )(jnp.array([n_true], jnp.int32), xT, wT.astype(matmul_dtype),
      b.astype(jnp.float32))


def _head_pallas(xT, w4T, b4, woT, bo, *, n_tile, matmul_dtype):
    f_in, n_pad = xT.shape
    c = w4T.shape[0]
    oc = woT.shape[0]
    num_tiles = n_pad // n_tile
    grid_spec = pltpu.PrefetchScalarGridSpec(
        num_scalar_prefetch=0,
        grid=(num_tiles,),
        in_specs=[
            pl.BlockSpec((f_in, n_tile), lambda i: (0, i)),
            pl.BlockSpec((c, f_in), lambda i: (0, 0)),
            pl.BlockSpec((c, 1), lambda i: (0, 0)),
            pl.BlockSpec((oc, c), lambda i: (0, 0)),
            pl.BlockSpec((oc, 1), lambda i: (0, 0)),
        ],
        out_specs=pl.BlockSpec((oc, n_tile), lambda i: (0, i)),
    )
    return pl.pallas_call(
        _head_kernel,
        grid_spec=grid_spec,
        out_shape=jax.ShapeDtypeStruct((oc, n_pad), jnp.float32),
        compiler_params=pltpu.CompilerParams(dimension_semantics=("parallel",)),
    )(xT, w4T.astype(matmul_dtype), b4.astype(jnp.float32),
      woT.astype(matmul_dtype), bo.astype(jnp.float32))


# Plain-JAX mirrors of the two kernels (used only for the exactness self-check).
def _layer_jnp(xT, wT, b, *, n_true, matmul_dtype):
    del n_true  # no batch padding on this path
    acc = jnp.dot(wT.astype(matmul_dtype), xT.astype(matmul_dtype),
                  preferred_element_type=jnp.float32)
    h = jnp.tanh(acc + b)
    s = jnp.sum(h, axis=1, keepdims=True)[None]
    q = jnp.sum(h * h, axis=1, keepdims=True)[None]
    return h.astype(matmul_dtype), s, q


def _head_jnp(xT, w4T, b4, woT, bo, *, matmul_dtype):
    h = jnp.tanh(jnp.dot(w4T.astype(matmul_dtype), xT.astype(matmul_dtype),
                         preferred_element_type=jnp.float32) + b4)
    return jnp.dot(woT.astype(matmul_dtype), h.astype(matmul_dtype),
                   preferred_element_type=jnp.float32) + bo


# ---------------------------------------------------------------------------
# BatchNorm fold + full pipeline
# ---------------------------------------------------------------------------

def _fold_bn_into_next(ssum, ssq, n, gamma, beta, w_next_t, b_next):
    """Fold training-mode BatchNorm1d (per-batch stats, biased variance) into the
    next linear layer:  BN(h) @ W + b  ==  h @ (scale*W) + (b + (beta - mu*scale) @ W).
    All f32, O(F * F_out) work done once per layer in the wrapper."""
    total = jnp.sum(ssum, axis=0)[:, 0]                  # [F]
    total_sq = jnp.sum(ssq, axis=0)[:, 0]                # [F]
    mu = total / n
    var = jnp.maximum(total_sq / n - mu * mu, 0.0)       # biased variance
    scale = gamma * jax.lax.rsqrt(var + BN_EPS)
    shift = beta - mu * scale
    w_folded = w_next_t * scale[None, :]                 # scale columns of W^T
    b_folded = b_next + (w_next_t @ shift)[:, None]
    return w_folded, b_folded


def _pipeline(x, params, out_channel, n_tile, matmul_dtype, use_pallas):
    n = x.shape[0]
    if use_pallas:
        tile = _round_up(max(128, min(n_tile, _round_up(n, 128))), 128)
        n_pad = _round_up(n, tile)
        xT = jnp.pad(x, ((0, n_pad - n), (0, 0))).T      # [C, n_pad] (batch on lanes)
        layer = functools.partial(_layer_pallas, n_true=n, n_tile=tile,
                                  matmul_dtype=matmul_dtype)
        head = functools.partial(_head_pallas, n_tile=tile, matmul_dtype=matmul_dtype)
    else:
        xT = x.T
        layer = functools.partial(_layer_jnp, n_true=n, matmul_dtype=matmul_dtype)
        head = functools.partial(_head_jnp, matmul_dtype=matmul_dtype)

    # fc1 -> tanh                      (+ partial stats for bn1)
    h1, s1, q1 = layer(xT, params["w1"].T, params["b1"].reshape(-1, 1))
    # bn1 folded into fc2;  fc2 -> tanh (+ partial stats for bn2)
    w2f, b2f = _fold_bn_into_next(s1, q1, n, params["g1"], params["be1"],
                                  params["w2"].T, params["b2"].reshape(-1, 1))
    h2, s2, q2 = layer(h1, w2f, b2f)
    # bn2 folded into fc3;  fc3 -> tanh (+ partial stats for bn3)
    w3f, b3f = _fold_bn_into_next(s2, q2, n, params["g2"], params["be2"],
                                  params["w3"].T, params["b3"].reshape(-1, 1))
    h3, s3, q3 = layer(h2, w3f, b3f)
    # bn3 folded into fc4;  fc4 -> tanh -> fused out_channel heads
    w4f, b4f = _fold_bn_into_next(s3, q3, n, params["g3"], params["be3"],
                                  params["w4"].T, params["b4"].reshape(-1, 1))
    yT = head(h3, w4f, b4f, params["wo"].T, params["bo"].reshape(-1, 1))

    y = yT[:, :n].T                                      # drop batch padding
    return [y[:, k:k + 1] for k in range(out_channel)]


@functools.partial(jax.jit,
                   static_argnames=("out_channel", "n_tile", "matmul_dtype", "use_pallas"))
def redis_twice_dnn_forward(x, params, out_channel, n_tile=1024,
                            matmul_dtype=jnp.bfloat16, use_pallas=True):
    """RedisTwiceDNN forward.  Returns a list of [N, 1] arrays (one per head).
    X.float() of the module is handled by the single in-kernel operand cast."""
    return _pipeline(x, params, out_channel, n_tile, matmul_dtype, use_pallas)


# ---------------------------------------------------------------------------
# Parameters + pure-f32 reference (PyTorch-faithful semantics)
# ---------------------------------------------------------------------------

def init_params(key, in_channel, out_channel):
    c = in_channel
    dims = [(c, 2 * c), (2 * c, 4 * c), (4 * c, 2 * c), (2 * c, c)]
    keys = jax.random.split(key, 2 * len(dims) + 2)
    params = {}
    ki = 0
    for idx, (fi, fo) in enumerate(dims, start=1):
        params[f"w{idx}"] = 0.1 * jax.random.normal(keys[ki], (fi, fo), jnp.float32)
        ki += 1
        params[f"b{idx}"] = 0.05 * jax.random.normal(keys[ki], (fo,), jnp.float32)
        ki += 1
    # Fresh nn.BatchNorm1d affine params: gamma = 1, beta = 0.
    params["g1"] = jnp.ones((2 * c,), jnp.float32)
    params["be1"] = jnp.zeros((2 * c,), jnp.float32)
    params["g2"] = jnp.ones((4 * c,), jnp.float32)
    params["be2"] = jnp.zeros((4 * c,), jnp.float32)
    params["g3"] = jnp.ones((2 * c,), jnp.float32)
    params["be3"] = jnp.zeros((2 * c,), jnp.float32)
    # out_channel independent Linear(c, 1) heads fused into one [c, out_channel] matrix.
    params["wo"] = 0.1 * jax.random.normal(keys[ki], (c, out_channel), jnp.float32)
    ki += 1
    params["bo"] = 0.05 * jax.random.normal(keys[ki], (out_channel,), jnp.float32)
    return params


def reference_forward(x, params, out_channel):
    """Pure-f32 JAX reference matching the PyTorch module (training-mode BN)."""
    x = x.astype(jnp.float32)

    def bn(h, g, b):
        mu = jnp.mean(h, axis=0, keepdims=True)
        var = jnp.mean((h - mu) ** 2, axis=0, keepdims=True)
        return (h - mu) * jax.lax.rsqrt(var + BN_EPS) * g + b

    h = bn(jnp.tanh(x @ params["w1"] + params["b1"]), params["g1"], params["be1"])
    h = bn(jnp.tanh(h @ params["w2"] + params["b2"]), params["g2"], params["be2"])
    h = bn(jnp.tanh(h @ params["w3"] + params["b3"]), params["g3"], params["be3"])
    h = jnp.tanh(h @ params["w4"] + params["b4"])
    y = h @ params["wo"] + params["bo"]
    return [y[:, k:k + 1] for k in range(out_channel)]


if __name__ == "__main__":
    IN_CHANNEL = 16
    OUT_CHANNEL = 4
    BATCH = 300        # deliberately NOT a multiple of the tile: exercises masking
    N_TILE = 128       # small tile so the demo runs a multi-step, multi-tile grid

    key = jax.random.PRNGKey(0)
    k_x, k_p = jax.random.split(key)
    x = jax.random.normal(k_x, (BATCH, IN_CHANNEL), jnp.float32)
    params = init_params(k_p, IN_CHANNEL, OUT_CHANNEL)

    outs = redis_twice_dnn_forward(x, params, OUT_CHANNEL, n_tile=N_TILE)
    outs = [jax.block_until_ready(o) for o in outs]

    # Check 1: Pallas kernels vs. the identical plain-JAX pipeline (same bf16 MXU
    # operands, same BN folding) -- tight tolerance (kernel exactness).
    mirror = redis_twice_dnn_forward(x, params, OUT_CHANNEL, n_tile=N_TILE,
                                     use_pallas=False)
    # Check 2: semantics vs. the pure-f32 PyTorch-faithful reference -- loose
    # tolerance since the fast path feeds the MXU bf16 operands.
    refs = reference_forward(x, params, OUT_CHANNEL)

    for o, m, r in zip(outs, mirror, refs):
        assert o.shape == (BATCH, 1)
        assert jnp.allclose(o, m, atol=5e-3, rtol=5e-3), float(jnp.max(jnp.abs(o - m)))
        assert jnp.allclose(o, r, atol=5e-2, rtol=5e-2), float(jnp.max(jnp.abs(o - r)))

    print("KERNEL_OK")
</pallas_src>

<mosaic_0001>
module attributes {stable_mosaic.version = 11 : i64} {
  func.func @_layer_kernel(%arg0: i32, %arg1: memref<1xi32, #tpu.memory_space<smem>>, %arg2: memref<32x128xbf16, #tpu.memory_space<vmem>>, %arg3: memref<64x32xbf16, #tpu.memory_space<vmem>>, %arg4: memref<64x1xf32, #tpu.memory_space<vmem>>, %arg5: memref<64x128xbf16, #tpu.memory_space<vmem>>, %arg6: memref<1x64x1xf32, #tpu.memory_space<vmem>>, %arg7: memref<1x64x1xf32, #tpu.memory_space<vmem>>) attributes {dimension_semantics = [#tpu.dimension_semantics<parallel>], iteration_bounds = array<i64: 3>, scalar_prefetch = 1 : i64, scratch_operands = 0 : i64, tpu.core_type = #tpu.core_type<tc>, window_params = [{transform_indices = @transform_0, window_bounds = array<i64: 32, 128>}, {pipeline_mode = #tpu.pipeline_mode<synchronous>, transform_indices = @transform_1, window_bounds = array<i64: 64, 32>}, {pipeline_mode = #tpu.pipeline_mode<synchronous>, transform_indices = @transform_2, window_bounds = array<i64: 64, 1>}, {transform_indices = @transform_3, window_bounds = array<i64: 64, 128>}, {transform_indices = @transform_4, window_bounds = array<i64: 1, 64, 1>}, {transform_indices = @transform_5, window_bounds = array<i64: 1, 64, 1>}]} {
    %c0 = arith.constant 0 : index
    %c0_0 = arith.constant 0 : index
    %0 = vector.load %arg3[%c0, %c0_0] : memref<64x32xbf16, #tpu.memory_space<vmem>>, vector<64x32xbf16>
    %c0_1 = arith.constant 0 : index
    %c0_2 = arith.constant 0 : index
    %1 = vector.load %arg2[%c0_1, %c0_2] : memref<32x128xbf16, #tpu.memory_space<vmem>>, vector<32x128xbf16>
    %cst = arith.constant dense<0.000000e+00> : vector<64x128xf32>
    %2 = tpu.matmul %0, %1, %cst {dimension_numbers = #tpu.dot_dimension_numbers<[1], [0], [0], [1], [0, 0, 1, 1], [], []>} : vector<64x32xbf16>, vector<32x128xbf16>, vector<64x128xf32> -> vector<64x128xf32>
    %c0_3 = arith.constant 0 : index
    %c0_4 = arith.constant 0 : index
    %3 = vector.load %arg4[%c0_3, %c0_4] : memref<64x1xf32, #tpu.memory_space<vmem>>, vector<64x1xf32>
    %4 = vector.broadcast %3 : vector<64x1xf32> to vector<64x128xf32>
    %5 = arith.addf %2, %4 : vector<64x128xf32>
    %6 = math.tanh %5 : vector<64x128xf32>
    %7 = arith.truncf %6 : vector<64x128xf32> to vector<64x128xbf16>
    %c0_5 = arith.constant 0 : index
    %c0_6 = arith.constant 0 : index
    %8 = vector.load %arg5[%c0_5, %c0_6] : memref<64x128xbf16, #tpu.memory_space<vmem>>, vector<64x128xbf16>
    tpu.vector_store %arg5[%c0_5, %c0_6], %7 {strides = array<i32>} : memref<64x128xbf16, #tpu.memory_space<vmem>>, vector<64x128xbf16>,
    %9 = tpu.iota {dimensions = array<i32: 1>} : vector<1x128xi32>
    %c128_i32 = arith.constant 128 : i32
    %10 = arith.muli %arg0, %c128_i32 : i32
    %11 = vector.broadcast %10 : i32 to vector<1x128xi32>
    %12 = arith.addi %9, %11 : vector<1x128xi32>
    %c0_7 = arith.constant 0 : index
    %13 = memref.load %arg1[%c0_7] : memref<1xi32, #tpu.memory_space<smem>>
    %14 = vector.broadcast %13 : i32 to vector<1x128xi32>
    %15 = arith.cmpi slt, %12, %14 : vector<1x128xi32>
    %cst_8 = arith.constant 0.000000e+00 : f32
    %16 = vector.shape_cast %15 : vector<1x128xi1> to vector<1x128xi1>
    %17 = vector.broadcast %16 : vector<1x128xi1> to vector<64x128xi1>
    %18 = vector.broadcast %cst_8 : f32 to vector<64x128xf32>
    %19 = arith.select %17, %6, %18 : vector<64x128xi1>, vector<64x128xf32>
    %cst_9 = arith.constant dense<0.000000e+00> : vector<64xf32>
    %20 = vector.multi_reduction <add>, %19, %cst_9 [1] : vector<64x128xf32> to vector<64xf32>
    %21 = vector.shape_cast %20 : vector<64xf32> to vector<64x1xf32>
    %c0_10 = arith.constant 0 : index
    %c0_11 = arith.constant 0 : index
    %c0_12 = arith.constant 0 : index
    %22 = vector.load %arg6[%c0_10, %c0_11, %c0_12] : memref<1x64x1xf32, #tpu.memory_space<vmem>>, vector<1x64x1xf32>
    %23 = vector.shape_cast %22 : vector<1x64x1xf32> to vector<64x1xf32>
    %24 = vector.shape_cast %21 : vector<64x1xf32> to vector<1x64x1xf32>
    tpu.vector_store %arg6[%c0_10, %c0_11, %c0_12], %24 {strides = array<i32>} : memref<1x64x1xf32, #tpu.memory_space<vmem>>, vector<1x64x1xf32>,
    %25 = arith.mulf %19, %19 : vector<64x128xf32>
    %cst_13 = arith.constant dense<0.000000e+00> : vector<64xf32>
    %26 = vector.multi_reduction <add>, %25, %cst_13 [1] : vector<64x128xf32> to vector<64xf32>
    %27 = vector.shape_cast %26 : vector<64xf32> to vector<64x1xf32>
    %c0_14 = arith.constant 0 : index
    %c0_15 = arith.constant 0 : index
    %c0_16 = arith.constant 0 : index
    %28 = vector.load %arg7[%c0_14, %c0_15, %c0_16] : memref<1x64x1xf32, #tpu.memory_space<vmem>>, vector<1x64x1xf32>
    %29 = vector.shape_cast %28 : vector<1x64x1xf32> to vector<64x1xf32>
    %30 = vector.shape_cast %27 : vector<64x1xf32> to vector<1x64x1xf32>
    tpu.vector_store %arg7[%c0_14, %c0_15, %c0_16], %30 {strides = array<i32>} : memref<1x64x1xf32, #tpu.memory_space<vmem>>, vector<1x64x1xf32>,
    return
  }
  func.func @transform_0(%arg0: i32, %arg1: memref<1xi32, #tpu.memory_space<smem>>) -> (i32, i32) {
    %c0_i32 = arith.constant 0 : i32
    %c0_i32_0 = arith.constant 0 : i32
    return %c0_i32, %arg0 : i32, i32
  }
  func.func @transform_1(%arg0: i32, %arg1: memref<1xi32, #tpu.memory_space<smem>>) -> (i32, i32) {
    %c0_i32 = arith.constant 0 : i32
    %c0_i32_0 = arith.constant 0 : i32
    %c0_i32_1 = arith.constant 0 : i32
    return %c0_i32, %c0_i32_0 : i32, i32
  }
  func.func @transform_2(%arg0: i32, %arg1: memref<1xi32, #tpu.memory_space<smem>>) -> (i32, i32) {
    %c0_i32 = arith.constant 0 : i32
    %c0_i32_0 = arith.constant 0 : i32
    %c0_i32_1 = arith.constant 0 : i32
    return %c0_i32, %c0_i32_0 : i32, i32
  }
  func.func @transform_3(%arg0: i32, %arg1: memref<1xi32, #tpu.memory_space<smem>>) -> (i32, i32) {
    %c0_i32 = arith.constant 0 : i32
    %c0_i32_0 = arith.constant 0 : i32
    return %c0_i32, %arg0 : i32, i32
  }
  func.func @transform_4(%arg0: i32, %arg1: memref<1xi32, #tpu.memory_space<smem>>) -> (i32, i32, i32) {
    %c0_i32 = arith.constant 0 : i32
    %c0_i32_0 = arith.constant 0 : i32
    %c0_i32_1 = arith.constant 0 : i32
    return %arg0, %c0_i32, %c0_i32_0 : i32, i32, i32
  }
  func.func @transform_5(%arg0: i32, %arg1: memref<1xi32, #tpu.memory_space<smem>>) -> (i32, i32, i32) {
    %c0_i32 = arith.constant 0 : i32
    %c0_i32_0 = arith.constant 0 : i32
    %c0_i32_1 = arith.constant 0 : i32
    return %arg0, %c0_i32, %c0_i32_0 : i32, i32, i32
  }
}

module attributes {stable_mosaic.version = 11 : i64} {
  func.func @_layer_kernel(%arg0: i32, %arg1: memref<1xi32, #tpu.memory_space<smem>>, %arg2: memref<16x128xf32, #tpu.memory_space<vmem>>, %arg3: memref<32x16xbf16, #tpu.memory_space<vmem>>, %arg4: memref<32x1xf32, #tpu.memory_space<vmem>>, %arg5: memref<32x128xbf16, #tpu.memory_space<vmem>>, %arg6: memref<1x32x1xf32, #tpu.memory_space<vmem>>, %arg7: memref<1x32x1xf32, #tpu.memory_space<vmem>>) attributes {dimension_semantics = [#tpu.dimension_semantics<parallel>], iteration_bounds = array<i64: 3>, scalar_prefetch = 1 : i64, scratch_operands = 0 : i64, tpu.core_type = #tpu.core_type<tc>, window_params = [{transform_indices = @transform_0, window_bounds = array<i64: 16, 128>}, {pipeline_mode = #tpu.pipeline_mode<synchronous>, transform_indices = @transform_1, window_bounds = array<i64: 32, 16>}, {pipeline_mode = #tpu.pipeline_mode<synchronous>, transform_indices = @transform_2, window_bounds = array<i64: 32, 1>}, {transform_indices = @transform_3, window_bounds = array<i64: 32, 128>}, {transform_indices = @transform_4, window_bounds = array<i64: 1, 32, 1>}, {transform_indices = @transform_5, window_bounds = array<i64: 1, 32, 1>}]} {
    %c0 = arith.constant 0 : index
    %c0_0 = arith.constant 0 : index
    %0 = vector.load %arg3[%c0, %c0_0] : memref<32x16xbf16, #tpu.memory_space<vmem>>, vector<32x16xbf16>
    %c0_1 = arith.constant 0 : index
    %c0_2 = arith.constant 0 : index
    %1 = vector.load %arg2[%c0_1, %c0_2] : memref<16x128xf32, #tpu.memory_space<vmem>>, vector<16x128xf32>
    %2 = arith.truncf %1 : vector<16x128xf32> to vector<16x128xbf16>
    %cst = arith.constant dense<0.000000e+00> : vector<32x128xf32>
    %3 = tpu.matmul %0, %2, %cst {dimension_numbers = #tpu.dot_dimension_numbers<[1], [0], [0], [1], [0, 0, 1, 1], [], []>} : vector<32x16xbf16>, vector<16x128xbf16>, vector<32x128xf32> -> vector<32x128xf32>
    %c0_3 = arith.constant 0 : index
    %c0_4 = arith.constant 0 : index
    %4 = vector.load %arg4[%c0_3, %c0_4] : memref<32x1xf32, #tpu.memory_space<vmem>>, vector<32x1xf32>
    %5 = vector.broadcast %4 : vector<32x1xf32> to vector<32x128xf32>
    %6 = arith.addf %3, %5 : vector<32x128xf32>
    %7 = math.tanh %6 : vector<32x128xf32>
    %8 = arith.truncf %7 : vector<32x128xf32> to vector<32x128xbf16>
    %c0_5 = arith.constant 0 : index
    %c0_6 = arith.constant 0 : index
    %9 = vector.load %arg5[%c0_5, %c0_6] : memref<32x128xbf16, #tpu.memory_space<vmem>>, vector<32x128xbf16>
    tpu.vector_store %arg5[%c0_5, %c0_6], %8 {strides = array<i32>} : memref<32x128xbf16, #tpu.memory_space<vmem>>, vector<32x128xbf16>,
    %10 = tpu.iota {dimensions = array<i32: 1>} : vector<1x128xi32>
    %c128_i32 = arith.constant 128 : i32
    %11 = arith.muli %arg0, %c128_i32 : i32
    %12 = vector.broadcast %11 : i32 to vector<1x128xi32>
    %13 = arith.addi %10, %12 : vector<1x128xi32>
    %c0_7 = arith.constant 0 : index
    %14 = memref.load %arg1[%c0_7] : memref<1xi32, #tpu.memory_space<smem>>
    %15 = vector.broadcast %14 : i32 to vector<1x128xi32>
    %16 = arith.cmpi slt, %13, %15 : vector<1x128xi32>
    %cst_8 = arith.constant 0.000000e+00 : f32
    %17 = vector.shape_cast %16 : vector<1x128xi1> to vector<1x128xi1>
    %18 = vector.broadcast %17 : vector<1x128xi1> to vector<32x128xi1>
    %19 = vector.broadcast %cst_8 : f32 to vector<32x128xf32>
    %20 = arith.select %18, %7, %19 : vector<32x128xi1>, vector<32x128xf32>
    %cst_9 = arith.constant dense<0.000000e+00> : vector<32xf32>
    %21 = vector.multi_reduction <add>, %20, %cst_9 [1] : vector<32x128xf32> to vector<32xf32>
    %22 = vector.shape_cast %21 : vector<32xf32> to vector<32x1xf32>
    %c0_10 = arith.constant 0 : index
    %c0_11 = arith.constant 0 : index
    %c0_12 = arith.constant 0 : index
    %23 = vector.load %arg6[%c0_10, %c0_11, %c0_12] : memref<1x32x1xf32, #tpu.memory_space<vmem>>, vector<1x32x1xf32>
    %24 = vector.shape_cast %23 : vector<1x32x1xf32> to vector<32x1xf32>
    %25 = vector.shape_cast %22 : vector<32x1xf32> to vector<1x32x1xf32>
    tpu.vector_store %arg6[%c0_10, %c0_11, %c0_12], %25 {strides = array<i32>} : memref<1x32x1xf32, #tpu.memory_space<vmem>>, vector<1x32x1xf32>,
    %26 = arith.mulf %20, %20 : vector<32x128xf32>
    %cst_13 = arith.constant dense<0.000000e+00> : vector<32xf32>
    %27 = vector.multi_reduction <add>, %26, %cst_13 [1] : vector<32x128xf32> to vector<32xf32>
    %28 = vector.shape_cast %27 : vector<32xf32> to vector<32x1xf32>
    %c0_14 = arith.constant 0 : index
    %c0_15 = arith.constant 0 : index
    %c0_16 = arith.constant 0 : index
    %29 = vector.load %arg7[%c0_14, %c0_15, %c0_16] : memref<1x32x1xf32, #tpu.memory_space<vmem>>, vector<1x32x1xf32>
    %30 = vector.shape_cast %29 : vector<1x32x1xf32> to vector<32x1xf32>
    %31 = vector.shape_cast %28 : vector<32x1xf32> to vector<1x32x1xf32>
    tpu.vector_store %arg7[%c0_14, %c0_15, %c0_16], %31 {strides = array<i32>} : memref<1x32x1xf32, #tpu.memory_space<vmem>>, vector<1x32x1xf32>,
    return
  }
  func.func @transform_0(%arg0: i32, %arg1: memref<1xi32, #tpu.memory_space<smem>>) -> (i32, i32) {
    %c0_i32 = arith.constant 0 : i32
    %c0_i32_0 = arith.constant 0 : i32
    return %c0_i32, %arg0 : i32, i32
  }
  func.func @transform_1(%arg0: i32, %arg1: memref<1xi32, #tpu.memory_space<smem>>) -> (i32, i32) {
    %c0_i32 = arith.constant 0 : i32
    %c0_i32_0 = arith.constant 0 : i32
    %c0_i32_1 = arith.constant 0 : i32
    return %c0_i32, %c0_i32_0 : i32, i32
  }
  func.func @transform_2(%arg0: i32, %arg1: memref<1xi32, #tpu.memory_space<smem>>) -> (i32, i32) {
    %c0_i32 = arith.constant 0 : i32
    %c0_i32_0 = arith.constant 0 : i32
    %c0_i32_1 = arith.constant 0 : i32
    return %c0_i32, %c0_i32_0 : i32, i32
  }
  func.func @transform_3(%arg0: i32, %arg1: memref<1xi32, #tpu.memory_space<smem>>) -> (i32, i32) {
    %c0_i32 = arith.constant 0 : i32
    %c0_i32_0 = arith.constant 0 : i32
    return %c0_i32, %arg0 : i32, i32
  }
  func.func @transform_4(%arg0: i32, %arg1: memref<1xi32, #tpu.memory_space<smem>>) -> (i32, i32, i32) {
    %c0_i32 = arith.constant 0 : i32
    %c0_i32_0 = arith.constant 0 : i32
    %c0_i32_1 = arith.constant 0 : i32
    return %arg0, %c0_i32, %c0_i32_0 : i32, i32, i32
  }
  func.func @transform_5(%arg0: i32, %arg1: memref<1xi32, #tpu.memory_space<smem>>) -> (i32, i32, i32) {
    %c0_i32 = arith.constant 0 : i32
    %c0_i32_0 = arith.constant 0 : i32
    %c0_i32_1 = arith.constant 0 : i32
    return %arg0, %c0_i32, %c0_i32_0 : i32, i32, i32
  }
}

module attributes {stable_mosaic.version = 11 : i64} {
  func.func @_layer_kernel(%arg0: i32, %arg1: memref<1xi32, #tpu.memory_space<smem>>, %arg2: memref<64x128xbf16, #tpu.memory_space<vmem>>, %arg3: memref<32x64xbf16, #tpu.memory_space<vmem>>, %arg4: memref<32x1xf32, #tpu.memory_space<vmem>>, %arg5: memref<32x128xbf16, #tpu.memory_space<vmem>>, %arg6: memref<1x32x1xf32, #tpu.memory_space<vmem>>, %arg7: memref<1x32x1xf32, #tpu.memory_space<vmem>>) attributes {dimension_semantics = [#tpu.dimension_semantics<parallel>], iteration_bounds = array<i64: 3>, scalar_prefetch = 1 : i64, scratch_operands = 0 : i64, tpu.core_type = #tpu.core_type<tc>, window_params = [{transform_indices = @transform_0, window_bounds = array<i64: 64, 128>}, {pipeline_mode = #tpu.pipeline_mode<synchronous>, transform_indices = @transform_1, window_bounds = array<i64: 32, 64>}, {pipeline_mode = #tpu.pipeline_mode<synchronous>, transform_indices = @transform_2, window_bounds = array<i64: 32, 1>}, {transform_indices = @transform_3, window_bounds = array<i64: 32, 128>}, {transform_indices = @transform_4, window_bounds = array<i64: 1, 32, 1>}, {transform_indices = @transform_5, window_bounds = array<i64: 1, 32, 1>}]} {
    %c0 = arith.constant 0 : index
    %c0_0 = arith.constant 0 : index
    %0 = vector.load %arg3[%c0, %c0_0] : memref<32x64xbf16, #tpu.memory_space<vmem>>, vector<32x64xbf16>
    %c0_1 = arith.constant 0 : index
    %c0_2 = arith.constant 0 : index
    %1 = vector.load %arg2[%c0_1, %c0_2] : memref<64x128xbf16, #tpu.memory_space<vmem>>, vector<64x128xbf16>
    %cst = arith.constant dense<0.000000e+00> : vector<32x128xf32>
    %2 = tpu.matmul %0, %1, %cst {dimension_numbers = #tpu.dot_dimension_numbers<[1], [0], [0], [1], [0, 0, 1, 1], [], []>} : vector<32x64xbf16>, vector<64x128xbf16>, vector<32x128xf32> -> vector<32x128xf32>
    %c0_3 = arith.constant 0 : index
    %c0_4 = arith.constant 0 : index
    %3 = vector.load %arg4[%c0_3, %c0_4] : memref<32x1xf32, #tpu.memory_space<vmem>>, vector<32x1xf32>
    %4 = vector.broadcast %3 : vector<32x1xf32> to vector<32x128xf32>
    %5 = arith.addf %2, %4 : vector<32x128xf32>
    %6 = math.tanh %5 : vector<32x128xf32>
    %7 = arith.truncf %6 : vector<32x128xf32> to vector<32x128xbf16>
    %c0_5 = arith.constant 0 : index
    %c0_6 = arith.constant 0 : index
    %8 = vector.load %arg5[%c0_5, %c0_6] : memref<32x128xbf16, #tpu.memory_space<vmem>>, vector<32x128xbf16>
    tpu.vector_store %arg5[%c0_5, %c0_6], %7 {strides = array<i32>} : memref<32x128xbf16, #tpu.memory_space<vmem>>, vector<32x128xbf16>,
    %9 = tpu.iota {dimensions = array<i32: 1>} : vector<1x128xi32>
    %c128_i32 = arith.constant 128 : i32
    %10 = arith.muli %arg0, %c128_i32 : i32
    %11 = vector.broadcast %10 : i32 to vector<1x128xi32>
    %12 = arith.addi %9, %11 : vector<1x128xi32>
    %c0_7 = arith.constant 0 : index
    %13 = memref.load %arg1[%c0_7] : memref<1xi32, #tpu.memory_space<smem>>
    %14 = vector.broadcast %13 : i32 to vector<1x128xi32>
    %15 = arith.cmpi slt, %12, %14 : vector<1x128xi32>
    %cst_8 = arith.constant 0.000000e+00 : f32
    %16 = vector.shape_cast %15 : vector<1x128xi1> to vector<1x128xi1>
    %17 = vector.broadcast %16 : vector<1x128xi1> to vector<32x128xi1>
    %18 = vector.broadcast %cst_8 : f32 to vector<32x128xf32>
    %19 = arith.select %17, %6, %18 : vector<32x128xi1>, vector<32x128xf32>
    %cst_9 = arith.constant dense<0.000000e+00> : vector<32xf32>
    %20 = vector.multi_reduction <add>, %19, %cst_9 [1] : vector<32x128xf32> to vector<32xf32>
    %21 = vector.shape_cast %20 : vector<32xf32> to vector<32x1xf32>
    %c0_10 = arith.constant 0 : index
    %c0_11 = arith.constant 0 : index
    %c0_12 = arith.constant 0 : index
    %22 = vector.load %arg6[%c0_10, %c0_11, %c0_12] : memref<1x32x1xf32, #tpu.memory_space<vmem>>, vector<1x32x1xf32>
    %23 = vector.shape_cast %22 : vector<1x32x1xf32> to vector<32x1xf32>
    %24 = vector.shape_cast %21 : vector<32x1xf32> to vector<1x32x1xf32>
    tpu.vector_store %arg6[%c0_10, %c0_11, %c0_12], %24 {strides = array<i32>} : memref<1x32x1xf32, #tpu.memory_space<vmem>>, vector<1x32x1xf32>,
    %25 = arith.mulf %19, %19 : vector<32x128xf32>
    %cst_13 = arith.constant dense<0.000000e+00> : vector<32xf32>
    %26 = vector.multi_reduction <add>, %25, %cst_13 [1] : vector<32x128xf32> to vector<32xf32>
    %27 = vector.shape_cast %26 : vector<32xf32> to vector<32x1xf32>
    %c0_14 = arith.constant 0 : index
    %c0_15 = arith.constant 0 : index
    %c0_16 = arith.constant 0 : index
    %28 = vector.load %arg7[%c0_14, %c0_15, %c0_16] : memref<1x32x1xf32, #tpu.memory_space<vmem>>, vector<1x32x1xf32>
    %29 = vector.shape_cast %28 : vector<1x32x1xf32> to vector<32x1xf32>
    %30 = vector.shape_cast %27 : vector<32x1xf32> to vector<1x32x1xf32>
    tpu.vector_store %arg7[%c0_14, %c0_15, %c0_16], %30 {strides = array<i32>} : memref<1x32x1xf32, #tpu.memory_space<vmem>>, vector<1x32x1xf32>,
    return
  }
  func.func @transform_0(%arg0: i32, %arg1: memref<1xi32, #tpu.memory_space<smem>>) -> (i32, i32) {
    %c0_i32 = arith.constant 0 : i32
    %c0_i32_0 = arith.constant 0 : i32
    return %c0_i32, %arg0 : i32, i32
  }
  func.func @transform_1(%arg0: i32, %arg1: memref<1xi32, #tpu.memory_space<smem>>) -> (i32, i32) {
    %c0_i32 = arith.constant 0 : i32
    %c0_i32_0 = arith.constant 0 : i32
    %c0_i32_1 = arith.constant 0 : i32
    return %c0_i32, %c0_i32_0 : i32, i32
  }
  func.func @transform_2(%arg0: i32, %arg1: memref<1xi32, #tpu.memory_space<smem>>) -> (i32, i32) {
    %c0_i32 = arith.constant 0 : i32
    %c0_i32_0 = arith.constant 0 : i32
    %c0_i32_1 = arith.constant 0 : i32
    return %c0_i32, %c0_i32_0 : i32, i32
  }
  func.func @transform_3(%arg0: i32, %arg1: memref<1xi32, #tpu.memory_space<smem>>) -> (i32, i32) {
    %c0_i32 = arith.constant 0 : i32
    %c0_i32_0 = arith.constant 0 : i32
    return %c0_i32, %arg0 : i32, i32
  }
  func.func @transform_4(%arg0: i32, %arg1: memref<1xi32, #tpu.memory_space<smem>>) -> (i32, i32, i32) {
    %c0_i32 = arith.constant 0 : i32
    %c0_i32_0 = arith.constant 0 : i32
    %c0_i32_1 = arith.constant 0 : i32
    return %arg0, %c0_i32, %c0_i32_0 : i32, i32, i32
  }
  func.func @transform_5(%arg0: i32, %arg1: memref<1xi32, #tpu.memory_space<smem>>) -> (i32, i32, i32) {
    %c0_i32 = arith.constant 0 : i32
    %c0_i32_0 = arith.constant 0 : i32
    %c0_i32_1 = arith.constant 0 : i32
    return %arg0, %c0_i32, %c0_i32_0 : i32, i32, i32
  }
}

module attributes {stable_mosaic.version = 11 : i64} {
  func.func @_head_kernel(%arg0: i32, %arg1: memref<32x128xbf16, #tpu.memory_space<vmem>>, %arg2: memref<16x32xbf16, #tpu.memory_space<vmem>>, %arg3: memref<16x1xf32, #tpu.memory_space<vmem>>, %arg4: memref<4x16xbf16, #tpu.memory_space<vmem>>, %arg5: memref<4x1xf32, #tpu.memory_space<vmem>>, %arg6: memref<4x128xf32, #tpu.memory_space<vmem>>) attributes {dimension_semantics = [#tpu.dimension_semantics<parallel>], iteration_bounds = array<i64: 3>, scalar_prefetch = 0 : i64, scratch_operands = 0 : i64, tpu.core_type = #tpu.core_type<tc>, window_params = [{transform_indices = @transform_0, window_bounds = array<i64: 32, 128>}, {pipeline_mode = #tpu.pipeline_mode<synchronous>, transform_indices = @transform_1, window_bounds = array<i64: 16, 32>}, {pipeline_mode = #tpu.pipeline_mode<synchronous>, transform_indices = @transform_2, window_bounds = array<i64: 16, 1>}, {pipeline_mode = #tpu.pipeline_mode<synchronous>, transform_indices = @transform_3, window_bounds = array<i64: 4, 16>}, {pipeline_mode = #tpu.pipeline_mode<synchronous>, transform_indices = @transform_4, window_bounds = array<i64: 4, 1>}, {transform_indices = @transform_5, window_bounds = array<i64: 4, 128>}]} {
    %c0 = arith.constant 0 : index
    %c0_0 = arith.constant 0 : index
    %0 = vector.load %arg2[%c0, %c0_0] : memref<16x32xbf16, #tpu.memory_space<vmem>>, vector<16x32xbf16>
    %c0_1 = arith.constant 0 : index
    %c0_2 = arith.constant 0 : index
    %1 = vector.load %arg1[%c0_1, %c0_2] : memref<32x128xbf16, #tpu.memory_space<vmem>>, vector<32x128xbf16>
    %cst = arith.constant dense<0.000000e+00> : vector<16x128xf32>
    %2 = tpu.matmul %0, %1, %cst {dimension_numbers = #tpu.dot_dimension_numbers<[1], [0], [0], [1], [0, 0, 1, 1], [], []>} : vector<16x32xbf16>, vector<32x128xbf16>, vector<16x128xf32> -> vector<16x128xf32>
    %c0_3 = arith.constant 0 : index
    %c0_4 = arith.constant 0 : index
    %3 = vector.load %arg3[%c0_3, %c0_4] : memref<16x1xf32, #tpu.memory_space<vmem>>, vector<16x1xf32>
    %4 = vector.broadcast %3 : vector<16x1xf32> to vector<16x128xf32>
    %5 = arith.addf %2, %4 : vector<16x128xf32>
    %6 = math.tanh %5 : vector<16x128xf32>
    %c0_5 = arith.constant 0 : index
    %c0_6 = arith.constant 0 : index
    %7 = vector.load %arg4[%c0_5, %c0_6] : memref<4x16xbf16, #tpu.memory_space<vmem>>, vector<4x16xbf16>
    %8 = arith.truncf %6 : vector<16x128xf32> to vector<16x128xbf16>
    %cst_7 = arith.constant dense<0.000000e+00> : vector<4x128xf32>
    %9 = tpu.matmul %7, %8, %cst_7 {dimension_numbers = #tpu.dot_dimension_numbers<[1], [0], [0], [1], [0, 0, 1, 1], [], []>} : vector<4x16xbf16>, vector<16x128xbf16>, vector<4x128xf32> -> vector<4x128xf32>
    %c0_8 = arith.constant 0 : index
    %c0_9 = arith.constant 0 : index
    %10 = vector.load %arg5[%c0_8, %c0_9] : memref<4x1xf32, #tpu.memory_space<vmem>>, vector<4x1xf32>
    %11 = vector.broadcast %10 : vector<4x1xf32> to vector<4x128xf32>
    %12 = arith.addf %9, %11 : vector<4x128xf32>
    %c0_10 = arith.constant 0 : index
    %c0_11 = arith.constant 0 : index
    %13 = vector.load %arg6[%c0_10, %c0_11] : memref<4x128xf32, #tpu.memory_space<vmem>>, vector<4x128xf32>
    tpu.vector_store %arg6[%c0_10, %c0_11], %12 {strides = array<i32>} : memref<4x128xf32, #tpu.memory_space<vmem>>, vector<4x128xf32>,
    return
  }
  func.func @transform_0(%arg0: i32) -> (i32, i32) {
    %c0_i32 = arith.constant 0 : i32
    %c0_i32_0 = arith.constant 0 : i32
    return %c0_i32, %arg0 : i32, i32
  }
  func.func @transform_1(%arg0: i32) -> (i32, i32) {
    %c0_i32 = arith.constant 0 : i32
    %c0_i32_0 = arith.constant 0 : i32
    %c0_i32_1 = arith.constant 0 : i32
    return %c0_i32, %c0_i32_0 : i32, i32
  }
  func.func @transform_2(%arg0: i32) -> (i32, i32) {
    %c0_i32 = arith.constant 0 : i32
    %c0_i32_0 = arith.constant 0 : i32
    %c0_i32_1 = arith.constant 0 : i32
    return %c0_i32, %c0_i32_0 : i32, i32
  }
  func.func @transform_3(%arg0: i32) -> (i32, i32) {
    %c0_i32 = arith.constant 0 : i32
    %c0_i32_0 = arith.constant 0 : i32
    %c0_i32_1 = arith.constant 0 : i32
    return %c0_i32, %c0_i32_0 : i32, i32
  }
  func.func @transform_4(%arg0: i32) -> (i32, i32) {
    %c0_i32 = arith.constant 0 : i32
    %c0_i32_0 = arith.constant 0 : i32
    %c0_i32_1 = arith.constant 0 : i32
    return %c0_i32, %c0_i32_0 : i32, i32
  }
  func.func @transform_5(%arg0: i32) -> (i32, i32) {
    %c0_i32 = arith.constant 0 : i32
    %c0_i32_0 = arith.constant 0 : i32
    return %c0_i32, %arg0 : i32, i32
  }
}

</mosaic_0001>

<bundles_post_ra>
// kernel: redis_twice_dnn_forward.7
= control target key start
LH: loop header
LB: loop body
LE: loop exit
PB: predicated region body
PF: predicated region fallthrough
CT: control target
= control target key end

     0   :  { %s601_s18 = smov 0   ;;  %s603_s19 = smov 0   ;;  %s670_s0 = inlined_call_operand.vmem [shape: bf16[32,384], index: 0, kind: input, shape index: {}]   ;;  %s671_s1 = inlined_call_operand.vmem [shape: bf16[16,32], index: 1, kind: input, shape index: {}]   ;;  %s672_s2 = inlined_call_operand.vmem [shape: f32[16,1], index: 2, kind: input, shape index: {}]   ;;  %s673_s3 = inlined_call_operand.vmem [shape: bf16[4,16], index: 3, kind: input, shape index: {}]   ;;  %s674_s4 = inlined_call_operand.vmem [shape: f32[4,1], index: 4, kind: input, shape index: {}]   ;;  %s675_s5 = inlined_call_operand.vmem [shape: f32[4,384], index: 5, kind: output, shape index: {}]  }
   0x1   :  { %s605_s20 = smov 0  }
   0x2 LB: > { %s473_s21 = sadd.s32 4294967295, %s566_s20   ;;  %s618_s22 = sadd.s32 1, %s566_s20   ;;  %s566_s20 = sphi %s605_s20, %s678_s20   ;;  %s562_s19 = sphi %s603_s19, %s677_s19   ;;  %s558_s18 = sphi %s601_s18, %s676_s18  }
   0x3   : > { %s19_s23 = ssub.s32 %s566_s20, %s618_s22  ;;  %s22_s24 = sadd.s32 1, %s562_s19 }
   0x4   : > { %p20_p0 = scmp.eq.s32.totalorder %s19_s23, 0  ;;  %p29_p1 = scmp.ne.s32.totalorder %s562_s19, %s558_s18 }
   0x5   : > { %p30_p2 = scmp.eq.s32.totalorder %s566_s20, 0  ;;  %p476_p4 = scmp.ge.s32.totalorder %s566_s20, 3 }
   0x6   : > { %s627_s25 = scalar_select %p20_p0, %s562_s19, %s22_s24  }
   0x7   : > { %p31_p3 = por %p30_p2, %p29_p1  ;;  %177 = sbr.rel (%p476_p4) target bundleno = 18 (0x12), region = 32 }
   0xc   : > { %180 = sbr.rel (!%p31_p3) target bundleno = 18 (0x12), region = 36  ;;  %s182_s26 = sand.u32 (%p31_p3), 1, %s562_s19  }
   0xd   : > { %s478_s27 = sshll.u32 (%p31_p3), %s566_s20, 2  ;;  %s477_s28 = sshll.u32 (%p31_p3), %s182_s26, 4 }
   0xe   : > { %s186_s6 = scalar_lea.vmem (%p31_p3), %s670_s0, %s478_s27  ;;  %s184_s7 = scalar_lea.vmem (%p31_p3), [#allocation2], %s477_s28 }
   0xf   : > { %v203_v0 = vld [vmem:[%s186_s6] sm:$0xf] (%p31_p3)  ;;  %v205_v1 = vld [vmem:[%s186_s6 + $0xc] sm:$0xf] (%p31_p3)  ;;  %v207_v2 = vld [vmem:[%s186_s6 + $0x18] sm:$0xf] (%p31_p3) }
  0x10   : > { %204 = vst [vmem:[%s184_s7] sm:$0xf] (%p31_p3), %v203_v0  ;;  %206 = vst [vmem:[%s184_s7 + $0x4] sm:$0xf] (%p31_p3), %v205_v1  ;;  %v209_v3 = vld [vmem:[%s186_s6 + $0x24] sm:$0xf] (%p31_p3) }
  0x11   : > { %208 = vst [vmem:[%s184_s7 + $0x8] sm:$0xf] %v207_v2  ;;  %210 = vst [vmem:[%s184_s7 + $0xc] sm:$0xf] %v209_v3 }
  0x12 PF: > { %p479_p5 = scmp.ge.s32.totalorder %s566_s20, 1  ;;  %p241_p6 = scmp.lt.s32.totalorder %s566_s20, 4 }
  0x14   : > { %p242_p7 = pnand %p479_p5, %p241_p6 }
  0x15   : > { %s248_s8 = sand.u32 (!%p242_p7), 1, %s558_s18   ;;  %p274_p8 = scmp.lt.s32.totalorder (!%p242_p7), %s473_s21, 2 }
  0x16   : > { %245 = sbr.rel (%p242_p7) target bundleno = 455 (0x1c7), region = 77  ;;  %s480_s9 = sshll.u32 (!%p242_p7), %s248_s8, 4 }
  0x17   : > { %s250_s12 = scalar_lea.vmem (!%p242_p7), [#allocation2], %s480_s9 }
  0x1b   : > { %v568_v4 = vmov 0.0   ;;  %vm569_vm0 = vmmov 0   ;;  %v285_v5 = vld [vmem:[%s672_s2] sm:$0xff]  ;;  %v570_v6 = vmov 0   ;;  %v537_v7 = vld [vmem:[%s250_s12 + $0x8] sm:$0xff]   ;;  %vm314_vm1 = vcmask 261120  }
  0x1c   : > { %494 = vmatprep.subr.bf16.mxu0 %v568_v4  ;;  %498 = vmatprep.mubr.msk.bf16.mxu0 %vm569_vm0, %v568_v4  ;;  %v286_v8 = vld [vmem:[%s672_s2 + $0x8] sm:$0xff]  ;;  %v538_v9 = vld [vmem:[%s250_s12] sm:$0xff]   ;;  %vm369_vm2 = vcmask 130048   ;;  %s680_s21 = smov (!%p274_p8, %s473_s21), 2 }
  0x1d   : > { %535 = vset.pattern.permute.xlu0 %v570_v6  ;;  %502 = vmatprep.subr.bf16.mxu1 %v568_v4  ;;  %v539_v10 = vld [vmem:[%s671_s1] sm:$0xff]   ;;  %s481_s26 = sshll.u32 %s680_s21, 2 }
  0x1e   : > { %289 = vperm.xlu0 %535, %v285_v5   ;;  %504 = vmatprep.mubr.msk.bf16.mxu1 %vm569_vm0, %v568_v4  ;;  %v363_v11 = vld [vmem:[%s674_s4] sm:$0xf]  ;;  %s277_s29 = scalar_lea.vmem %s675_s5, %s481_s26 }
  0x1f   : > { %536 = vset.pattern.permute.xlu1 %v570_v6  ;;  %495 = vmatpush3.bf16.msra.mxu0 %v537_v7  ;;  %v361_v23 = vld [vmem:[%s673_s3] sm:$0x3] }
  0x20   : > { %496 = vmatprep.subr.bf16.mxu0 %v568_v4  ;;  %366 = vperm.xlu1 %536, %v363_v11  }
  0x22   : > { %294 = vperm.xlu0 %535, %v286_v8  }
  0x23   : > { %497 = vmatpush3.bf16.msra.mxu0 %v538_v9 }
  0x26   : > { %499 = vmatmul.mubr.msk.bf16.vlgmr.msra.gmra.mxu0 %vm314_vm1, %v539_v10 }
  0x99   : > { %v290_v12 = vpop.permute.xlu0 %289 }
  0x9b   : > { %v367_v24 = vpop.permute.xlu1 %366 }
  0x9d   : > { %v295_v16 = vpop.permute.xlu0 %294 }
  0xe6   : > { %v352_v13 = vpop.f32.mrf.mxu0 }
  0xe7   : > { %v353_v14 = vadd.f32 %v352_v13, %v290_v12 }
  0xe8   : > { %v500_v15 = vpop.f32.mrf.mxu0 }
  0xe9   : > { %540 = vtanh.f32 %v353_v14 }
  0xea   : > { %v355_v17 = vpop.f32.mrf.mxu0 }
  0xeb   : > { %v356_v18 = vadd.f32 %v355_v17, %v295_v16 }
  0xec   : > { %v501_v19 = vpop.f32.mrf.mxu0 }
  0xed   : > { %542 = vtanh.f32 %v356_v18 }
  0xf6   : > { %v541_v20 = vpop.eup %540 }
  0xfa   : > { %v543_v21 = vpop.eup %542 }
  0xfb   : > { %v362_v22 = vpack.c.bf16 %v543_v21, %v541_v20 }
  0xfd   : > { %503 = vmatpush3.bf16.msra.mxu1 %v362_v22 }
 0x100   : > { %505 = vmatmul.mubr.msk.bf16.vlgmr.msra.gmra.mxu1 %vm369_vm2, %v361_v23 }
 0x1c0   : > { %v407_v25 = vpop.f32.mrf.mxu1 }
 0x1c1   : > { %v408_v26 = vadd.f32 %v407_v25, %v367_v24 }
 0x1c2   : > { %v506_v27 = vpop.f32.mrf.mxu1 }
 0x1c3   : > { %413 = vst [vmem:[%s277_s29] sm:$0xf] %v408_v26 }
 0x1c4   : > { %v410_v28 = vpop.f32.mrf.mxu1 }
 0x1c6   : > { %v507_v29 = vpop.f32.mrf.mxu1 }
 0x1c7 PF: > { %p12_p9 = scmp.ge.s32.totalorder %s618_s22, 5   ;;  %s676_s18 = smov %s562_s19 }
 0x1c8   : > { %s677_s19 = smov %s627_s25  ;;  %s678_s20 = smov %s618_s22 }
 0x1c9   :  { %14 = sbr.rel (!%p12_p9) target bundleno = 2 (0x2), region = 116 }

// kernel: redis_twice_dnn_forward.4
= control target key start
LH: loop header
LB: loop body
LE: loop exit
PB: predicated region body
PF: predicated region fallthrough
CT: control target
= control target key end

     0   :  { %s897_s0 = inlined_call_operand.<no memory space> [shape: s32[1], index: 0, kind: input, shape index: {}]   ;;  %s898_s1 = inlined_call_operand.vmem [shape: f32[16,384], index: 1, kind: input, shape index: {}]   ;;  %s899_s2 = inlined_call_operand.vmem [shape: bf16[32,16], index: 2, kind: input, shape index: {}]   ;;  %s900_s3 = inlined_call_operand.vmem [shape: f32[32,1], index: 3, kind: input, shape index: {}]   ;;  %s901_s4 = inlined_call_operand.vmem [shape: bf16[32,384], index: 4, kind: output, shape index: {0}]   ;;  %s902_s5 = inlined_call_operand.vmem [shape: f32[3,32,1], index: 5, kind: output, shape index: {1}]   ;;  %s903_s6 = inlined_call_operand.vmem [shape: f32[3,32,1], index: 6, kind: output, shape index: {2}]  }
   0x1   :  { %12 = sst [smem:[#allocation3]] %s897_s0 }
   0x2   :  { %s786_s23 = smov 0   ;;  %s788_s24 = smov 0  }
   0x3   :  { %s790_s25 = smov 0  }
   0x4 LB: > { %s799_s0 = sadd.s32 4294967295, %s745_s25   ;;  %s801_s26 = sadd.s32 1, %s745_s25   ;;  %s745_s25 = sphi %s790_s25, %s909_s25   ;;  %s741_s24 = sphi %s788_s24, %s908_s24   ;;  %s737_s23 = sphi %s786_s23, %s907_s23  }
   0x5   : > { %s22_s27 = ssub.s32 %s745_s25, %s801_s26  ;;  %s25_s28 = sadd.s32 1, %s741_s24 }
   0x6   : > { %p23_p0 = scmp.eq.s32.totalorder %s22_s27, 0  ;;  %p32_p1 = scmp.ne.s32.totalorder %s741_s24, %s737_s23 }
   0x7   : > { %p33_p2 = scmp.eq.s32.totalorder %s745_s25, 0  ;;  %p104_p3 = scmp.eq.s32.totalorder %s799_s0, 2 }
   0x8   : > { %s809_s29 = scalar_select %p23_p0, %s741_s24, %s25_s28  }
   0x9   : > { %p34_p4 = por %p33_p2, %p32_p1  ;;  %p811_p5 = por %p104_p3, %p32_p1 }
   0xa   : > { %p637_p6 = scmp.ge.s32.totalorder %s745_s25, 3 }
   0xc   : > { %184 = sbr.rel (%p637_p6) target bundleno = 22 (0x16), region = 24 }
  0x11   : > { %187 = sbr.rel (!%p34_p4) target bundleno = 22 (0x16), region = 28  ;;  %s189_s7 = sand.u32 (%p34_p4), 1, %s741_s24  }
  0x12   : > { %s639_s8 = sshll.u32 (%p34_p4), %s745_s25, 3  ;;  %s638_s9 = sshll.u32 (%p34_p4), %s189_s7, 4 }
  0x13   : > { %s193_s12 = scalar_lea.vmem (%p34_p4), %s898_s1, %s639_s8  ;;  %s191_s13 = scalar_lea.vmem (%p34_p4), [#allocation4], %s638_s9 }
  0x14   : > { %v224_v0 = vld [vmem:[%s193_s12] sm:$0xff] (%p34_p4)  ;;  %v226_v1 = vld [vmem:[%s193_s12 + $0x18] sm:$0xff] (%p34_p4) }
  0x15   : > { %225 = vst [vmem:[%s191_s13] sm:$0xff] (%p34_p4), %v224_v0  ;;  %227 = vst [vmem:[%s191_s13 + $0x8] sm:$0xff] (%p34_p4), %v226_v1 }
  0x16 PF: > { %p640_p7 = scmp.ge.s32.totalorder %s745_s25, 1  ;;  %p232_p8 = scmp.lt.s32.totalorder %s745_s25, 4 }
  0x18   : > { %p233_p9 = pnand %p640_p7, %p232_p8 }
  0x19   : > { %s239_s14 = sand.u32 (!%p233_p9), 1, %s737_s23   ;;  %s412_s9 = sld [smem:[#allocation3]] (!%p233_p9) }
  0x1a   : > { %236 = sbr.rel (%p233_p9) target bundleno = 404 (0x194), region = 66  ;;  %s823_s17 = sshll.u32 (!%p233_p9), %s239_s14, 4 }
  0x1b   : > { %s241_s20 = scalar_lea.vmem (!%p233_p9), [#allocation4], %s823_s17  ;;  %s655_s10 = sshll.u32 (!%p233_p9), %s799_s0, 7 }
  0x1c   : > { %s853_s11 = scalar_lea.vmem (!%p233_p9), [#allocation5], %s823_s17  ;;  %p275_p10 = scmp.lt.s32.totalorder (!%p233_p9), %s799_s0, 2 }
  0x1f   : > { %v713_v2 = vld [vmem:[%s899_s2] sm:$0xff]   ;;  %vm327_vm0 = vcmask 130048   ;;  %v295_v3 = vld [vmem:[%s900_s3 + $0x10] sm:$0xff]  ;;  %v291_v5 = vld [vmem:[%s241_s20 + $0x8] sm:$0xff]  ;;  %v747_v6 = vmov 0   ;;  %v407_v17 = vlaneseq  ;;  %v410_v26 = vstv %s655_s10  ;;  %s276_s12 = scalar_select %p275_p10, %s799_s0, 2 }
  0x20   : > { %682 = vmatprep.mubr.msk.bf16.mxu0 %vm327_vm0, %v713_v2  ;;  %v290_v4 = vld [vmem:[%s241_s20] sm:$0xff]  ;;  %712 = vset.pattern.permute.xlu1 %v747_v6  ;;  %v296_v9 = vld [vmem:[%s900_s3 + $0x18] sm:$0xff]  ;;  %v294_v10 = vld [vmem:[%s900_s3 + $0x8] sm:$0xff]  ;;  %v413_v28 = vstv %s412_s9  ;;  %vm429_vm2 = vcmask 7168   ;;  %s657_s20 = sshll.u32 (%p811_p5), %s799_s0, 2 }
  0x21   : > { %711 = vset.pattern.permute.xlu0 %v747_v6  ;;  %v293_v7 = vld [vmem:[%s900_s3] sm:$0xff]  ;;  %v292_v8 = vpack.c.bf16 %v291_v5, %v290_v4  ;;  %309 = vperm.xlu1 %712, %v295_v3   ;;  %v714_v11 = vld [vmem:[%s899_s2 + $0x8] sm:$0xff]   ;;  %v408_v24 = vand.u32 127, %v407_v17  ;;  %s660_s13 = sshll.u32 %s276_s12, 5  ;;  %s468_s23 = scalar_lea.vmem (%p811_p5), %s901_s4, %s657_s20 }
  0x22   : > { %299 = vperm.xlu0 %711, %v293_v7   ;;  %s279_s16 = scalar_lea.vmem %s902_s5, %s660_s13  ;;  %s284_s19 = scalar_lea.vmem %s903_s6, %s660_s13 }
  0x23   : > { %680 = vmatprep.subr.bf16.mxu0 %v292_v8  ;;  %v411_v27 = vadd.s32 %v410_v26, %v408_v24 }
  0x24   : > { %681 = vmatpush3.bf16.msra.mxu0 %v292_v8 }
  0x25   : > { %314 = vperm.xlu1 %712, %v296_v9   ;;  %vm844_vm1 = vcmp.lt.s32.totalorder %v411_v27, %v413_v28 }
  0x26   : > { %304 = vperm.xlu0 %711, %v294_v10  }
  0x27   : > { %683 = vmatmul.mubr.msk.bf16.vlgmr.msra.gmra.mxu0 %vm327_vm0, %v714_v11 }
  0x9c   : > { %v310_v12 = vpop.permute.xlu1 %309 }
  0x9d   : > { %v300_v13 = vpop.permute.xlu0 %299 }
  0xa0   : > { %v315_v19 = vpop.permute.xlu1 %314 }
  0xa1   : > { %v305_v22 = vpop.permute.xlu0 %304 }
  0xe7   : > { %v684_v14 = vpop.f32.mrf.mxu0 }
  0xe8   : > { %v377_v15 = vadd.f32 %v684_v14, %v310_v12 }
  0xe9   : > { %v368_v16 = vpop.f32.mrf.mxu0 }
  0xea   : > { %715 = vtanh.f32 %v377_v15  ;;  %v369_v18 = vadd.f32 %v368_v16, %v300_v13 }
  0xeb   : > { %v685_v20 = vpop.f32.mrf.mxu0 }
  0xec   : > { %717 = vtanh.f32 %v369_v18  ;;  %v380_v21 = vadd.f32 %v685_v20, %v315_v19 }
  0xed   : > { %v371_v23 = vpop.f32.mrf.mxu0 }
  0xee   : > { %719 = vtanh.f32 %v380_v21  ;;  %v372_v25 = vadd.f32 %v371_v23, %v305_v22 }
  0xf0   : > { %721 = vtanh.f32 %v372_v25 }
  0xf7   : > { %v716_v30 = vpop.eup %715 }
  0xf8   : > { %v419_v31 = vsel %vm844_vm1, %v716_v30, 0.0 }
  0xf9   : > { %v718_v32 = vpop.eup %717  ;;  %425 = vadd.xlane.f32.xlu0 %v419_v31  ;;  %v436_v42 = vmul.f32 %v419_v31, %v419_v31 }
  0xfa   : > { %v417_v33 = vsel %vm844_vm1, %v718_v32, 0.0 }
  0xfb   : > { %v720_v34 = vpop.eup %719  ;;  %v434_v35 = vmul.f32 %v417_v33, %v417_v33 }
  0xfc   : > { %v674_v36 = vpack.c.bf16 %v720_v34, %v716_v30  ;;  %v420_v39 = vsel %vm844_vm1, %v720_v34, 0.0 }
  0xfd   : > { %v722_v37 = vpop.eup %721  ;;  %421 = vadd.xlane.f32.xlu0 %v417_v33  ;;  %438 = vadd.xlane.f32.xlu1 %v434_v35  ;;  %v437_v43 = vmul.f32 %v420_v39, %v420_v39 }
  0xfe   : > { %676 = vst [vmem:[%s853_s11 + $0x8] sm:$0xff] %v674_v36   ;;  %v669_v38 = vpack.c.bf16 %v722_v37, %v718_v32  ;;  %v418_v40 = vsel %vm844_vm1, %v722_v37, 0.0 }
  0xff   : > { %v435_v41 = vmul.f32 %v418_v40, %v418_v40 }
 0x100   : > { %670 = vst [vmem:[%s853_s11] sm:$0xff] %v669_v38  }
 0x101   : > { %427 = vadd.xlane.f32.xlu0 %v420_v39  ;;  %423 = vadd.xlane.f32.xlu1 %v418_v40 }
 0x105   : > { %440 = vadd.xlane.f32.xlu0 %v435_v41  ;;  %442 = vadd.xlane.f32.xlu1 %v436_v42  ;;  %v489_v54 = vld [vmem:[%s853_s11 + $0x8] sm:$0xf] (%p811_p5)  ;;  %v491_v55 = vld [vmem:[%s853_s11 + $0xc] sm:$0xf] (%p811_p5) }
 0x106   : > { %490 = vst [vmem:[%s468_s23 + $0x18] sm:$0xf] (%p811_p5), %v489_v54  ;;  %492 = vst [vmem:[%s468_s23 + $0x24] sm:$0xf] (%p811_p5), %v491_v55 }
 0x107   : > { %v485_v52 = vld [vmem:[%s853_s11] sm:$0xf] (%p811_p5)  ;;  %v487_v53 = vld [vmem:[%s853_s11 + $0x4] sm:$0xf] (%p811_p5) }
 0x108   : > { %486 = vst [vmem:[%s468_s23] sm:$0xf] (%p811_p5), %v485_v52  ;;  %488 = vst [vmem:[%s468_s23 + $0xc] sm:$0xf] (%p811_p5), %v487_v53 }
 0x109   : > { %444 = vadd.xlane.f32.xlu0 %v437_v43 }
 0x182   : > { %v426_v44 = vpop.xlane.xlu0 %425 }
 0x183   : > { %432 = vst.msk [vmem:[%s279_s16 + $0x10] sm:$0xff] %vm429_vm2, %v426_v44 }
 0x186   : > { %v422_v45 = vpop.xlane.xlu0 %421  ;;  %v439_v46 = vpop.xlane.xlu1 %438 }
 0x187   : > { %430 = vst.msk [vmem:[%s279_s16] sm:$0xff] %vm429_vm2, %v422_v45  ;;  %446 = vst.msk [vmem:[%s284_s19] sm:$0xff] %vm429_vm2, %v439_v46 }
 0x18a   : > { %v428_v47 = vpop.xlane.xlu0 %427  ;;  %v424_v48 = vpop.xlane.xlu1 %423 }
 0x18b   : > { %433 = vst.msk [vmem:[%s279_s16 + $0x18] sm:$0xff] %vm429_vm2, %v428_v47  ;;  %431 = vst.msk [vmem:[%s279_s16 + $0x8] sm:$0xff] %vm429_vm2, %v424_v48 }
 0x18e   : > { %v441_v49 = vpop.xlane.xlu0 %440  ;;  %v443_v50 = vpop.xlane.xlu1 %442 }
 0x18f   : > { %447 = vst.msk [vmem:[%s284_s19 + $0x8] sm:$0xff] %vm429_vm2, %v441_v49  ;;  %448 = vst.msk [vmem:[%s284_s19 + $0x10] sm:$0xff] %vm429_vm2, %v443_v50  ;;  %466 = sbr.rel (!%p811_p5) target bundleno = 404 (0x194), region = 74 }
 0x192   : > { %v445_v51 = vpop.xlane.xlu0 %444 }
 0x193   : > { %449 = vst.msk [vmem:[%s284_s19 + $0x18] sm:$0xff] %vm429_vm2, %v445_v51 }
 0x194 PF: > { %p15_p11 = scmp.ge.s32.totalorder %s801_s26, 5   ;;  %s907_s23 = smov %s741_s24 }
 0x195   : > { %s908_s24 = smov %s809_s29  ;;  %s909_s25 = smov %s801_s26 }
 0x196   :  { %17 = sbr.rel (!%p15_p11) target bundleno = 4 (0x4), region = 170 }

// kernel: redis_twice_dnn_forward.6
= control target key start
LH: loop header
LB: loop body
LE: loop exit
PB: predicated region body
PF: predicated region fallthrough
CT: control target
= control target key end

     0   :  { %s985_s0 = inlined_call_operand.<no memory space> [shape: s32[1], index: 0, kind: input, shape index: {}]   ;;  %s986_s1 = inlined_call_operand.vmem [shape: bf16[64,384], index: 1, kind: input, shape index: {}]   ;;  %s987_s2 = inlined_call_operand.vmem [shape: bf16[32,64], index: 2, kind: input, shape index: {}]   ;;  %s988_s3 = inlined_call_operand.vmem [shape: f32[32,1], index: 3, kind: input, shape index: {}]   ;;  %s989_s4 = inlined_call_operand.vmem [shape: bf16[32,384], index: 4, kind: output, shape index: {0}]   ;;  %s990_s5 = inlined_call_operand.vmem [shape: f32[3,32,1], index: 5, kind: output, shape index: {1}]   ;;  %s991_s6 = inlined_call_operand.vmem [shape: f32[3,32,1], index: 6, kind: output, shape index: {2}]  }
   0x1   :  { %12 = sst [smem:[#allocation3]] %s985_s0 }
   0x2   :  { %s864_s23 = smov 0   ;;  %s866_s24 = smov 0  }
   0x3   :  { %s868_s25 = smov 0  }
   0x4 LB: > { %s880_s0 = sadd.s32 4294967295, %s823_s25   ;;  %s883_s26 = sadd.s32 1, %s823_s25   ;;  %s823_s25 = sphi %s868_s25, %s997_s25   ;;  %s819_s24 = sphi %s866_s24, %s996_s24   ;;  %s815_s23 = sphi %s864_s23, %s995_s23  }
   0x5   : > { %s22_s27 = ssub.s32 %s823_s25, %s883_s26  ;;  %s25_s28 = sadd.s32 1, %s819_s24 }
   0x6   : > { %p23_p0 = scmp.eq.s32.totalorder %s22_s27, 0  ;;  %p32_p1 = scmp.ne.s32.totalorder %s819_s24, %s815_s23 }
   0x7   : > { %p33_p2 = scmp.eq.s32.totalorder %s823_s25, 0  ;;  %p104_p3 = scmp.eq.s32.totalorder %s880_s0, 2 }
   0x8   : > { %s893_s29 = scalar_select %p23_p0, %s819_s24, %s25_s28  }
   0x9   : > { %p34_p4 = por %p33_p2, %p32_p1  ;;  %p895_p5 = por %p104_p3, %p32_p1 }
   0xa   : > { %p698_p6 = scmp.ge.s32.totalorder %s823_s25, 3 }
   0xc   : > { %184 = sbr.rel (%p698_p6) target bundleno = 26 (0x1a), region = 24 }
  0x11   : > { %187 = sbr.rel (!%p34_p4) target bundleno = 26 (0x1a), region = 28  ;;  %s189_s7 = sand.u32 (%p34_p4), 1, %s819_s24  }
  0x12   : > { %s700_s8 = sshll.u32 (%p34_p4), %s823_s25, 2  ;;  %s699_s9 = sshll.u32 (%p34_p4), %s189_s7, 5 }
  0x13   : > { %s193_s12 = scalar_lea.vmem (%p34_p4), %s986_s1, %s700_s8  ;;  %s191_s13 = scalar_lea.vmem (%p34_p4), [#allocation4], %s699_s9 }
  0x14   : > { %v210_v0 = vld [vmem:[%s193_s12] sm:$0xf] (%p34_p4)  ;;  %v212_v1 = vld [vmem:[%s193_s12 + $0xc] sm:$0xf] (%p34_p4)  ;;  %v214_v2 = vld [vmem:[%s193_s12 + $0x18] sm:$0xf] (%p34_p4) }
  0x15   : > { %211 = vst [vmem:[%s191_s13] sm:$0xf] (%p34_p4), %v210_v0  ;;  %213 = vst [vmem:[%s191_s13 + $0x4] sm:$0xf] (%p34_p4), %v212_v1  ;;  %v216_v3 = vld [vmem:[%s193_s12 + $0x24] sm:$0xf] (%p34_p4) }
  0x16   : > { %v218_v4 = vld [vmem:[%s193_s12 + $0x30] sm:$0xf]  ;;  %215 = vst [vmem:[%s191_s13 + $0x8] sm:$0xf] %v214_v2  ;;  %217 = vst [vmem:[%s191_s13 + $0xc] sm:$0xf] %v216_v3 }
  0x17   : > { %219 = vst [vmem:[%s191_s13 + $0x10] sm:$0xf] %v218_v4  ;;  %v220_v5 = vld [vmem:[%s193_s12 + $0x3c] sm:$0xf]  ;;  %v222_v6 = vld [vmem:[%s193_s12 + $0x48] sm:$0xf] }
  0x18   : > { %v224_v7 = vld [vmem:[%s193_s12 + $0x54] sm:$0xf]  ;;  %221 = vst [vmem:[%s191_s13 + $0x14] sm:$0xf] %v220_v5  ;;  %223 = vst [vmem:[%s191_s13 + $0x18] sm:$0xf] %v222_v6 }
  0x19   : > { %225 = vst [vmem:[%s191_s13 + $0x1c] sm:$0xf] %v224_v7 }
  0x1a PF: > { %p701_p7 = scmp.ge.s32.totalorder %s823_s25, 1  ;;  %p264_p8 = scmp.lt.s32.totalorder %s823_s25, 4 }
  0x1c   : > { %p265_p9 = pnand %p701_p7, %p264_p8 }
  0x1d   : > { %s271_s14 = sand.u32 (!%p265_p9), 1, %s815_s23   ;;  %s473_s10 = sld [smem:[#allocation3]] (!%p265_p9) }
  0x1e   : > { %268 = sbr.rel (%p265_p9) target bundleno = 419 (0x1a3), region = 69  ;;  %s702_s17 = sshll.u32 (!%p265_p9), %s271_s14, 5 }
  0x1f   : > { %s273_s20 = scalar_lea.vmem (!%p265_p9), [#allocation4], %s702_s17  ;;  %s720_s11 = sshll.u32 (!%p265_p9), %s880_s0, 7 }
  0x20   : > { %s703_s12 = sshll.u32 (!%p265_p9), %s271_s14, 4  ;;  %p307_p10 = scmp.lt.s32.totalorder (!%p265_p9), %s880_s0, 2 }
  0x21   : > { %s941_s13 = scalar_lea.vmem (!%p265_p9), [#allocation5], %s703_s12 }
  0x23   : > { %v791_v8 = vld [vmem:[%s987_s2] sm:$0xff]   ;;  %vm388_vm0 = vcmask 523264   ;;  %v332_v9 = vld [vmem:[%s988_s3 + $0x10] sm:$0xff]  ;;  %v787_v10 = vld [vmem:[%s273_s20 + $0x18] sm:$0xff]   ;;  %v825_v11 = vmov 0   ;;  %v468_v24 = vlaneseq  ;;  %v471_v33 = vstv %s720_s11  ;;  %s308_s23 = scalar_select %p307_p10, %s880_s0, 2 }
  0x24   : > { %756 = vmatprep.mubr.msk.bf16.mxu0 %vm388_vm0, %v791_v8  ;;  %786 = vset.pattern.permute.xlu1 %v825_v11  ;;  %v788_v12 = vld [vmem:[%s273_s20 + $0x10] sm:$0xff]   ;;  %v333_v13 = vld [vmem:[%s988_s3 + $0x18] sm:$0xff]  ;;  %v789_v14 = vld [vmem:[%s273_s20 + $0x8] sm:$0xff]   ;;  %v474_v35 = vstv %s473_s10  ;;  %vm490_vm2 = vcmask 7168   ;;  %s722_s21 = sshll.u32 (%p895_p5), %s880_s0, 2 }
  0x25   : > { %785 = vset.pattern.permute.xlu0 %v825_v11  ;;  %346 = vperm.xlu1 %786, %v332_v9   ;;  %v330_v15 = vld [vmem:[%s988_s3] sm:$0xff]  ;;  %v331_v16 = vld [vmem:[%s988_s3 + $0x8] sm:$0xff]  ;;  %v469_v31 = vand.u32 127, %v468_v24  ;;  %s725_s14 = sshll.u32 %s308_s23, 5  ;;  %s529_s27 = scalar_lea.vmem (%p895_p5), %s989_s4, %s722_s21 }
  0x26   : > { %748 = vmatprep.subr.bf16.mxu0 %v787_v10  ;;  %336 = vperm.xlu0 %785, %v330_v15   ;;  %v790_v17 = vld [vmem:[%s273_s20] sm:$0xff]   ;;  %v792_v18 = vld [vmem:[%s987_s2 + $0x8] sm:$0xff]   ;;  %s311_s17 = scalar_lea.vmem %s990_s5, %s725_s14  ;;  %s316_s20 = scalar_lea.vmem %s991_s6, %s725_s14 }
  0x27   : > { %749 = vmatpush3.bf16.msra.mxu0 %v787_v10  ;;  %v472_v34 = vadd.s32 %v471_v33, %v469_v31 }
  0x28   : > { %750 = vmatprep.subr.bf16.mxu0 %v788_v12 }
  0x29   : > { %351 = vperm.xlu1 %786, %v333_v13   ;;  %vm931_vm1 = vcmp.lt.s32.totalorder %v472_v34, %v474_v35 }
  0x2a   : > { %341 = vperm.xlu0 %785, %v331_v16  }
  0x2b   : > { %751 = vmatpush3.bf16.msra.mxu0 %v788_v12 }
  0x2c   : > { %752 = vmatprep.subr.bf16.mxu0 %v789_v14 }
  0x2f   : > { %753 = vmatpush3.bf16.msra.mxu0 %v789_v14 }
  0x30   : > { %754 = vmatprep.subr.bf16.mxu0 %v790_v17 }
  0x33   : > { %755 = vmatpush3.bf16.msra.mxu0 %v790_v17 }
  0x36   : > { %757 = vmatmul.mubr.msk.bf16.vlgmr.msra.gmra.mxu0 %vm388_vm0, %v792_v18 }
  0xa0   : > { %v347_v19 = vpop.permute.xlu1 %346 }
  0xa1   : > { %v337_v20 = vpop.permute.xlu0 %336 }
  0xa4   : > { %v352_v26 = vpop.permute.xlu1 %351 }
  0xa5   : > { %v342_v29 = vpop.permute.xlu0 %341 }
  0xf6   : > { %v758_v21 = vpop.f32.mrf.mxu0 }
  0xf7   : > { %v438_v22 = vadd.f32 %v758_v21, %v347_v19 }
  0xf8   : > { %v429_v23 = vpop.f32.mrf.mxu0 }
  0xf9   : > { %793 = vtanh.f32 %v438_v22  ;;  %v430_v25 = vadd.f32 %v429_v23, %v337_v20 }
  0xfa   : > { %v759_v27 = vpop.f32.mrf.mxu0 }
  0xfb   : > { %795 = vtanh.f32 %v430_v25  ;;  %v441_v28 = vadd.f32 %v759_v27, %v352_v26 }
  0xfc   : > { %v432_v30 = vpop.f32.mrf.mxu0 }
  0xfd   : > { %797 = vtanh.f32 %v441_v28  ;;  %v433_v32 = vadd.f32 %v432_v30, %v342_v29 }
  0xff   : > { %799 = vtanh.f32 %v433_v32 }
 0x106   : > { %v794_v37 = vpop.eup %793 }
 0x107   : > { %v480_v38 = vsel %vm931_vm1, %v794_v37, 0.0 }
 0x108   : > { %v796_v39 = vpop.eup %795  ;;  %486 = vadd.xlane.f32.xlu0 %v480_v38  ;;  %v497_v49 = vmul.f32 %v480_v38, %v480_v38 }
 0x109   : > { %v478_v40 = vsel %vm931_vm1, %v796_v39, 0.0 }
 0x10a   : > { %v798_v41 = vpop.eup %797  ;;  %v495_v42 = vmul.f32 %v478_v40, %v478_v40 }
 0x10b   : > { %v739_v43 = vpack.c.bf16 %v798_v41, %v794_v37  ;;  %v481_v46 = vsel %vm931_vm1, %v798_v41, 0.0 }
 0x10c   : > { %v800_v44 = vpop.eup %799  ;;  %482 = vadd.xlane.f32.xlu0 %v478_v40  ;;  %499 = vadd.xlane.f32.xlu1 %v495_v42  ;;  %v498_v50 = vmul.f32 %v481_v46, %v481_v46 }
 0x10d   : > { %741 = vst [vmem:[%s941_s13 + $0x8] sm:$0xff] %v739_v43   ;;  %v734_v45 = vpack.c.bf16 %v800_v44, %v796_v39  ;;  %v479_v47 = vsel %vm931_vm1, %v800_v44, 0.0 }
 0x10e   : > { %v496_v48 = vmul.f32 %v479_v47, %v479_v47 }
 0x10f   : > { %735 = vst [vmem:[%s941_s13] sm:$0xff] %v734_v45  }
 0x110   : > { %488 = vadd.xlane.f32.xlu0 %v481_v46  ;;  %484 = vadd.xlane.f32.xlu1 %v479_v47 }
 0x114   : > { %501 = vadd.xlane.f32.xlu0 %v496_v48  ;;  %503 = vadd.xlane.f32.xlu1 %v497_v49  ;;  %v550_v61 = vld [vmem:[%s941_s13 + $0x8] sm:$0xf] (%p895_p5)  ;;  %v552_v62 = vld [vmem:[%s941_s13 + $0xc] sm:$0xf] (%p895_p5) }
 0x115   : > { %551 = vst [vmem:[%s529_s27 + $0x18] sm:$0xf] (%p895_p5), %v550_v61  ;;  %553 = vst [vmem:[%s529_s27 + $0x24] sm:$0xf] (%p895_p5), %v552_v62 }
 0x116   : > { %v546_v59 = vld [vmem:[%s941_s13] sm:$0xf] (%p895_p5)  ;;  %v548_v60 = vld [vmem:[%s941_s13 + $0x4] sm:$0xf] (%p895_p5) }
 0x117   : > { %547 = vst [vmem:[%s529_s27] sm:$0xf] (%p895_p5), %v546_v59  ;;  %549 = vst [vmem:[%s529_s27 + $0xc] sm:$0xf] (%p895_p5), %v548_v60 }
 0x118   : > { %505 = vadd.xlane.f32.xlu0 %v498_v50 }
 0x191   : > { %v487_v51 = vpop.xlane.xlu0 %486 }
 0x192   : > { %493 = vst.msk [vmem:[%s311_s17 + $0x10] sm:$0xff] %vm490_vm2, %v487_v51 }
 0x195   : > { %v483_v52 = vpop.xlane.xlu0 %482  ;;  %v500_v53 = vpop.xlane.xlu1 %499 }
 0x196   : > { %491 = vst.msk [vmem:[%s311_s17] sm:$0xff] %vm490_vm2, %v483_v52  ;;  %507 = vst.msk [vmem:[%s316_s20] sm:$0xff] %vm490_vm2, %v500_v53 }
 0x199   : > { %v489_v54 = vpop.xlane.xlu0 %488  ;;  %v485_v55 = vpop.xlane.xlu1 %484 }
 0x19a   : > { %494 = vst.msk [vmem:[%s311_s17 + $0x18] sm:$0xff] %vm490_vm2, %v489_v54  ;;  %492 = vst.msk [vmem:[%s311_s17 + $0x8] sm:$0xff] %vm490_vm2, %v485_v55 }
 0x19d   : > { %v502_v56 = vpop.xlane.xlu0 %501  ;;  %v504_v57 = vpop.xlane.xlu1 %503 }
 0x19e   : > { %508 = vst.msk [vmem:[%s316_s20 + $0x8] sm:$0xff] %vm490_vm2, %v502_v56  ;;  %509 = vst.msk [vmem:[%s316_s20 + $0x10] sm:$0xff] %vm490_vm2, %v504_v57  ;;  %527 = sbr.rel (!%p895_p5) target bundleno = 419 (0x1a3), region = 77 }
 0x1a1   : > { %v506_v58 = vpop.xlane.xlu0 %505 }
 0x1a2   : > { %510 = vst.msk [vmem:[%s316_s20 + $0x18] sm:$0xff] %vm490_vm2, %v506_v58 }
 0x1a3 PF: > { %p15_p11 = scmp.ge.s32.totalorder %s883_s26, 5   ;;  %s995_s23 = smov %s819_s24 }
 0x1a4   : > { %s996_s24 = smov %s893_s29  ;;  %s997_s25 = smov %s883_s26 }
 0x1a5   :  { %17 = sbr.rel (!%p15_p11) target bundleno = 4 (0x4), region = 173 }

// kernel: redis_twice_dnn_forward.5
= control target key start
LH: loop header
LB: loop body
LE: loop exit
PB: predicated region body
PF: predicated region fallthrough
CT: control target
= control target key end

     0   :  { %s1161_s0 = inlined_call_operand.<no memory space> [shape: s32[1], index: 0, kind: input, shape index: {}]   ;;  %s1162_s1 = inlined_call_operand.vmem [shape: bf16[32,384], index: 1, kind: input, shape index: {}]   ;;  %s1163_s2 = inlined_call_operand.vmem [shape: bf16[64,32], index: 2, kind: input, shape index: {}]   ;;  %s1164_s3 = inlined_call_operand.vmem [shape: f32[64,1], index: 3, kind: input, shape index: {}]   ;;  %s1165_s4 = inlined_call_operand.vmem [shape: bf16[64,384], index: 4, kind: output, shape index: {0}]   ;;  %s1166_s5 = inlined_call_operand.vmem [shape: f32[3,64,1], index: 5, kind: output, shape index: {1}]   ;;  %s1167_s6 = inlined_call_operand.vmem [shape: f32[3,64,1], index: 6, kind: output, shape index: {2}]  }
   0x1   :  { %12 = sst [smem:[#allocation3]] %s1161_s0 }
   0x2   :  { %s998_s23 = smov 0   ;;  %s1000_s24 = smov 0  }
   0x3   :  { %s1002_s25 = smov 0  }
   0x4 LB: > { %s1014_s0 = sadd.s32 4294967295, %s957_s25   ;;  %s1017_s26 = sadd.s32 1, %s957_s25   ;;  %s957_s25 = sphi %s1002_s25, %s1173_s25   ;;  %s953_s24 = sphi %s1000_s24, %s1172_s24   ;;  %s949_s23 = sphi %s998_s23, %s1171_s23  }
   0x5   : > { %s22_s27 = ssub.s32 %s957_s25, %s1017_s26  ;;  %s25_s28 = sadd.s32 1, %s953_s24 }
   0x6   : > { %p23_p0 = scmp.eq.s32.totalorder %s22_s27, 0  ;;  %p32_p1 = scmp.ne.s32.totalorder %s953_s24, %s949_s23 }
   0x7   : > { %p33_p2 = scmp.eq.s32.totalorder %s957_s25, 0  ;;  %p104_p3 = scmp.eq.s32.totalorder %s1014_s0, 2 }
   0x8   : > { %s1027_s29 = scalar_select %p23_p0, %s953_s24, %s25_s28  }
   0x9   : > { %p34_p4 = por %p33_p2, %p32_p1  ;;  %p1029_p5 = por %p104_p3, %p32_p1 }
   0xa   : > { %p798_p6 = scmp.ge.s32.totalorder %s957_s25, 3 }
   0xc   : > { %184 = sbr.rel (%p798_p6) target bundleno = 23 (0x17), region = 24 }
  0x11   : > { %187 = sbr.rel (!%p34_p4) target bundleno = 23 (0x17), region = 28  ;;  %s189_s7 = sand.u32 (%p34_p4), 1, %s953_s24  }
  0x12   : > { %s800_s8 = sshll.u32 (%p34_p4), %s957_s25, 2  ;;  %s799_s9 = sshll.u32 (%p34_p4), %s189_s7, 4 }
  0x13   : > { %s193_s12 = scalar_lea.vmem (%p34_p4), %s1162_s1, %s800_s8  ;;  %s191_s13 = scalar_lea.vmem (%p34_p4), [#allocation4], %s799_s9 }
  0x14   : > { %v210_v0 = vld [vmem:[%s193_s12] sm:$0xf] (%p34_p4)  ;;  %v212_v1 = vld [vmem:[%s193_s12 + $0xc] sm:$0xf] (%p34_p4)  ;;  %v214_v2 = vld [vmem:[%s193_s12 + $0x18] sm:$0xf] (%p34_p4) }
  0x15   : > { %211 = vst [vmem:[%s191_s13] sm:$0xf] (%p34_p4), %v210_v0  ;;  %213 = vst [vmem:[%s191_s13 + $0x4] sm:$0xf] (%p34_p4), %v212_v1  ;;  %v216_v3 = vld [vmem:[%s193_s12 + $0x24] sm:$0xf] (%p34_p4) }
  0x16   : > { %215 = vst [vmem:[%s191_s13 + $0x8] sm:$0xf] %v214_v2  ;;  %217 = vst [vmem:[%s191_s13 + $0xc] sm:$0xf] %v216_v3 }
  0x17 PF: > { %p801_p7 = scmp.ge.s32.totalorder %s957_s25, 1  ;;  %p248_p8 = scmp.lt.s32.totalorder %s957_s25, 4 }
  0x19   : > { %p249_p9 = pnand %p801_p7, %p248_p8 }
  0x1a   : > { %s255_s14 = sand.u32 (!%p249_p9), 1, %s949_s23   ;;  %s525_s25 = sld [smem:[#allocation3]] (!%p249_p9) }
  0x1b   : > { %252 = sbr.rel (%p249_p9) target bundleno = 424 (0x1a8), region = 69  ;;  %s802_s17 = sshll.u32 (!%p249_p9), %s255_s14, 4 }
  0x1c   : > { %s257_s20 = scalar_lea.vmem (!%p249_p9), [#allocation4], %s802_s17  ;;  %s826_s27 = sshll.u32 (!%p249_p9), %s1014_s0, 7 }
  0x1d   : > { %s803_s28 = sshll.u32 (!%p249_p9), %s255_s14, 5  ;;  %p291_p10 = scmp.lt.s32.totalorder (!%p249_p9), %s1014_s0, 2 }
  0x1e   : > { %s1099_s23 = scalar_lea.vmem (!%p249_p9), [#allocation5], %s803_s28 }
  0x20   : > { %v915_v4 = vld [vmem:[%s1163_s2] sm:$0xff]   ;;  %vm394_vm0 = vcmask 261120   ;;  %v916_v5 = vld [vmem:[%s1163_s2 + $0x10] sm:$0xff]   ;;  %v913_v6 = vld [vmem:[%s257_s20 + $0x8] sm:$0xff]   ;;  %v959_v8 = vmov 0   ;;  %v520_v32 = vlaneseq  ;;  %v523_v45 = vstv %s826_s27  ;;  %s292_s14 = scalar_select %p291_p10, %s1014_s0, 2 }
  0x21   : > { %874 = vmatprep.mubr.msk.bf16.mxu0 %vm394_vm0, %v915_v4  ;;  %878 = vmatprep.mubr.msk.bf16.mxu1 %vm394_vm0, %v916_v5  ;;  %v914_v7 = vld [vmem:[%s257_s20] sm:$0xff]   ;;  %v917_v11 = vld [vmem:[%s1163_s2 + $0x8] sm:$0xff]   ;;  %v918_v12 = vld [vmem:[%s1163_s2 + $0x18] sm:$0xff]   ;;  %v526_v47 = vstv %s525_s25  ;;  %vm554_vm2 = vcmask 7168   ;;  %s828_s15 = sshll.u32 (%p1029_p5), %s1014_s0, 2 }
  0x22   : > { %911 = vset.pattern.permute.xlu0 %v959_v8  ;;  %912 = vset.pattern.permute.xlu1 %v959_v8  ;;  %v314_v9 = vld [vmem:[%s1164_s3] sm:$0xff]  ;;  %v316_v10 = vld [vmem:[%s1164_s3 + $0x10] sm:$0xff]  ;;  %v315_v13 = vld [vmem:[%s1164_s3 + $0x8] sm:$0xff]  ;;  %v521_v42 = vand.u32 127, %v520_v32  ;;  %s831_s7 = sshll.u32 %s292_s14, 6  ;;  %s613_s18 = scalar_lea.vmem (%p1029_p5), %s1165_s4, %s828_s15 }
  0x23   : > { %870 = vmatprep.subr.bf16.mxu0 %v913_v6  ;;  %882 = vmatprep.subr.bf16.mxu1 %v913_v6  ;;  %v317_v14 = vld [vmem:[%s1164_s3 + $0x18] sm:$0xff]  ;;  %v318_v15 = vld [vmem:[%s1164_s3 + $0x20] sm:$0xff]  ;;  %v319_v16 = vld [vmem:[%s1164_s3 + $0x28] sm:$0xff]  ;;  %s295_s10 = scalar_lea.vmem %s1166_s5, %s831_s7  ;;  %s300_s13 = scalar_lea.vmem %s1167_s6, %s831_s7 }
  0x24   : > { %871 = vmatpush3.bf16.msra.mxu0 %v913_v6  ;;  %884 = vmatpush3.bf16.msra.mxu1 %v913_v6  ;;  %v320_v17 = vld [vmem:[%s1164_s3 + $0x30] sm:$0xff]  ;;  %v321_v18 = vld [vmem:[%s1164_s3 + $0x38] sm:$0xff]  ;;  %v524_v46 = vadd.s32 %v523_v45, %v521_v42 }
  0x25   : > { %872 = vmatprep.subr.bf16.mxu0 %v914_v7  ;;  %883 = vmatprep.subr.bf16.mxu1 %v914_v7 }
  0x26   : > { %324 = vperm.xlu0 %911, %v314_v9   ;;  %334 = vperm.xlu1 %912, %v316_v10   ;;  %vm1085_vm1 = vcmp.lt.s32.totalorder %v524_v46, %v526_v47 }
  0x28   : > { %873 = vmatpush3.bf16.msra.mxu0 %v914_v7  ;;  %885 = vmatpush3.bf16.msra.mxu1 %v914_v7 }
  0x2a   : > { %329 = vperm.xlu0 %911, %v315_v13   ;;  %339 = vperm.xlu1 %912, %v317_v14  }
  0x2b   : > { %875 = vmatmul.mubr.msk.bf16.vlgmr.msra.gmra.mxu0 %vm394_vm0, %v917_v11  ;;  %879 = vmatmul.mubr.msk.bf16.vlgmr.msra.gmra.mxu1 %vm394_vm0, %v918_v12 }
  0x2e   : > { %344 = vperm.xlu0 %911, %v318_v15   ;;  %349 = vperm.xlu1 %912, %v319_v16  }
  0x32   : > { %354 = vperm.xlu0 %911, %v320_v17   ;;  %359 = vperm.xlu1 %912, %v321_v18  }
  0xa1   : > { %v325_v19 = vpop.permute.xlu0 %324  ;;  %v335_v20 = vpop.permute.xlu1 %334 }
  0xa5   : > { %v330_v21 = vpop.permute.xlu0 %329  ;;  %v340_v22 = vpop.permute.xlu1 %339 }
  0xa9   : > { %v345_v23 = vpop.permute.xlu0 %344  ;;  %v350_v24 = vpop.permute.xlu1 %349 }
  0xad   : > { %v355_v25 = vpop.permute.xlu0 %354  ;;  %v360_v33 = vpop.permute.xlu1 %359 }
  0xeb   : > { %v876_v26 = vpop.f32.mrf.mxu0  ;;  %v880_v27 = vpop.f32.mrf.mxu1 }
  0xec   : > { %v450_v28 = vadd.f32 %v876_v26, %v335_v20  ;;  %v466_v29 = vadd.f32 %v880_v27, %v355_v25 }
  0xed   : > { %v441_v30 = vpop.f32.mrf.mxu0  ;;  %v457_v31 = vpop.f32.mrf.mxu1 }
  0xee   : > { %919 = vtanh.f32 %v450_v28  ;;  %v442_v34 = vadd.f32 %v441_v30, %v325_v19  ;;  %v458_v35 = vadd.f32 %v457_v31, %v345_v23 }
  0xef   : > { %921 = vtanh.f32 %v466_v29  ;;  %v877_v36 = vpop.f32.mrf.mxu0  ;;  %v881_v37 = vpop.f32.mrf.mxu1 }
  0xf0   : > { %923 = vtanh.f32 %v442_v34  ;;  %v453_v38 = vadd.f32 %v877_v36, %v340_v22  ;;  %v469_v39 = vadd.f32 %v881_v37, %v360_v33 }
  0xf1   : > { %925 = vtanh.f32 %v458_v35  ;;  %v444_v40 = vpop.f32.mrf.mxu0  ;;  %v460_v41 = vpop.f32.mrf.mxu1 }
  0xf2   : > { %927 = vtanh.f32 %v453_v38  ;;  %v445_v43 = vadd.f32 %v444_v40, %v330_v21  ;;  %v461_v44 = vadd.f32 %v460_v41, %v350_v24 }
  0xf3   : > { %929 = vtanh.f32 %v469_v39 }
  0xf4   : > { %931 = vtanh.f32 %v445_v43 }
  0xf5   : > { %933 = vtanh.f32 %v461_v44 }
  0xfb   : > { %v920_v49 = vpop.eup %919 }
  0xfc   : > { %v922_v50 = vpop.eup %921  ;;  %v532_v51 = vsel %vm1085_vm1, %v920_v49, 0.0 }
  0xfd   : > { %v924_v52 = vpop.eup %923  ;;  %v536_v53 = vsel %vm1085_vm1, %v922_v50, 0.0  ;;  %542 = vadd.xlane.f32.xlu0 %v532_v51  ;;  %v565_v1 = vmul.f32 %v532_v51, %v532_v51 }
  0xfe   : > { %v926_v54 = vpop.eup %925  ;;  %550 = vadd.xlane.f32.xlu1 %v536_v53  ;;  %v530_v58 = vsel %vm1085_vm1, %v924_v52, 0.0  ;;  %v569_v10 = vmul.f32 %v536_v53, %v536_v53 }
  0xff   : > { %v928_v55 = vpop.eup %927  ;;  %v534_v61 = vsel %vm1085_vm1, %v926_v54, 0.0  ;;  %v563_v4 = vmul.f32 %v530_v58, %v530_v58 }
 0x100   : > { %v930_v56 = vpop.eup %929  ;;  %v849_v57 = vpack.c.bf16 %v928_v55, %v920_v49  ;;  %v533_v2 = vsel %vm1085_vm1, %v928_v55, 0.0  ;;  %v567_v6 = vmul.f32 %v534_v61, %v534_v61 }
 0x101   : > { %v932_v59 = vpop.eup %931  ;;  %v859_v60 = vpack.c.bf16 %v930_v56, %v922_v50  ;;  %538 = vadd.xlane.f32.xlu0 %v530_v58  ;;  %v537_v3 = vsel %vm1085_vm1, %v930_v56, 0.0  ;;  %v566_v7 = vmul.f32 %v533_v2, %v533_v2 }
 0x102   : > { %v934_v62 = vpop.eup %933  ;;  %861 = vst [vmem:[%s1099_s23 + $0x8] sm:$0xff] %v849_v57   ;;  %v844_v63 = vpack.c.bf16 %v932_v59, %v924_v52  ;;  %546 = vadd.xlane.f32.xlu1 %v534_v61  ;;  %v531_v8 = vsel %vm1085_vm1, %v932_v59, 0.0  ;;  %v570_v12 = vmul.f32 %v537_v3, %v537_v3 }
 0x103   : > { %863 = vst [vmem:[%s1099_s23 + $0x18] sm:$0xff] %v859_v60   ;;  %v854_v0 = vpack.c.bf16 %v934_v62, %v926_v54  ;;  %v535_v5 = vsel %vm1085_vm1, %v934_v62, 0.0  ;;  %v564_v9 = vmul.f32 %v531_v8, %v531_v8 }
 0x104   : > { %845 = vst [vmem:[%s1099_s23] sm:$0xff] %v844_v63   ;;  %v568_v11 = vmul.f32 %v535_v5, %v535_v5 }
 0x105   : > { %862 = vst [vmem:[%s1099_s23 + $0x10] sm:$0xff] %v854_v0   ;;  %544 = vadd.xlane.f32.xlu0 %v533_v2 }
 0x106   : > { %575 = vadd.xlane.f32.xlu1 %v565_v1 }
 0x109   : > { %552 = vadd.xlane.f32.xlu0 %v537_v3  ;;  %v634_v31 = vld [vmem:[%s1099_s23 + $0x8] sm:$0xf] (%p1029_p5)  ;;  %v636_v32 = vld [vmem:[%s1099_s23 + $0xc] sm:$0xf] (%p1029_p5) }
 0x10a   : > { %571 = vadd.xlane.f32.xlu1 %v563_v4  ;;  %635 = vst [vmem:[%s613_s18 + $0x18] sm:$0xf] (%p1029_p5), %v634_v31  ;;  %637 = vst [vmem:[%s613_s18 + $0x24] sm:$0xf] (%p1029_p5), %v636_v32  ;;  %v642_v35 = vld [vmem:[%s1099_s23 + $0x18] sm:$0xf] (%p1029_p5) }
 0x10b   : > { %v630_v29 = vld [vmem:[%s1099_s23] sm:$0xf] (%p1029_p5)  ;;  %v632_v30 = vld [vmem:[%s1099_s23 + $0x4] sm:$0xf] (%p1029_p5)  ;;  %v644_v36 = vld [vmem:[%s1099_s23 + $0x1c] sm:$0xf] (%p1029_p5) }
 0x10c   : > { %v638_v33 = vld [vmem:[%s1099_s23 + $0x10] sm:$0xf] (%p1029_p5)  ;;  %631 = vst [vmem:[%s613_s18] sm:$0xf] (%p1029_p5), %v630_v29  ;;  %633 = vst [vmem:[%s613_s18 + $0xc] sm:$0xf] (%p1029_p5), %v632_v30 }
 0x10d   : > { %548 = vadd.xlane.f32.xlu0 %v535_v5  ;;  %639 = vst [vmem:[%s613_s18 + $0x30] sm:$0xf] (%p1029_p5), %v638_v33  ;;  %v640_v34 = vld [vmem:[%s1099_s23 + $0x14] sm:$0xf] (%p1029_p5)  ;;  %643 = vst [vmem:[%s613_s18 + $0x48] sm:$0xf] (%p1029_p5), %v642_v35 }
 0x10e   : > { %579 = vadd.xlane.f32.xlu1 %v567_v6  ;;  %641 = vst [vmem:[%s613_s18 + $0x3c] sm:$0xf] (%p1029_p5), %v640_v34  ;;  %645 = vst [vmem:[%s613_s18 + $0x54] sm:$0xf] (%p1029_p5), %v644_v36 }
 0x111   : > { %577 = vadd.xlane.f32.xlu0 %v566_v7 }
 0x112   : > { %540 = vadd.xlane.f32.xlu1 %v531_v8 }
 0x115   : > { %573 = vadd.xlane.f32.xlu0 %v564_v9 }
 0x116   : > { %583 = vadd.xlane.f32.xlu1 %v569_v10 }
 0x119   : > { %581 = vadd.xlane.f32.xlu0 %v568_v11 }
 0x11d   : > { %585 = vadd.xlane.f32.xlu0 %v570_v12 }
 0x186   : > { %v543_v13 = vpop.xlane.xlu0 %542 }
 0x187   : > { %v551_v14 = vpop.xlane.xlu1 %550  ;;  %557 = vst.msk [vmem:[%s295_s10 + $0x10] sm:$0xff] %vm554_vm2, %v543_v13 }
 0x188   : > { %561 = vst.msk [vmem:[%s295_s10 + $0x30] sm:$0xff] %vm554_vm2, %v551_v14 }
 0x18a   : > { %v539_v15 = vpop.xlane.xlu0 %538 }
 0x18b   : > { %v547_v16 = vpop.xlane.xlu1 %546  ;;  %555 = vst.msk [vmem:[%s295_s10] sm:$0xff] %vm554_vm2, %v539_v15 }
 0x18c   : > { %559 = vst.msk [vmem:[%s295_s10 + $0x20] sm:$0xff] %vm554_vm2, %v547_v16 }
 0x18e   : > { %v545_v17 = vpop.xlane.xlu0 %544 }
 0x18f   : > { %v576_v18 = vpop.xlane.xlu1 %575  ;;  %558 = vst.msk [vmem:[%s295_s10 + $0x18] sm:$0xff] %vm554_vm2, %v545_v17 }
 0x190   : > { %589 = vst.msk [vmem:[%s300_s13 + $0x10] sm:$0xff] %vm554_vm2, %v576_v18 }
 0x192   : > { %v553_v19 = vpop.xlane.xlu0 %552 }
 0x193   : > { %562 = vst.msk [vmem:[%s295_s10 + $0x38] sm:$0xff] %vm554_vm2, %v553_v19  ;;  %v572_v20 = vpop.xlane.xlu1 %571 }
 0x194   : > { %587 = vst.msk [vmem:[%s300_s13] sm:$0xff] %vm554_vm2, %v572_v20 }
 0x196   : > { %v549_v21 = vpop.xlane.xlu0 %548 }
 0x197   : > { %560 = vst.msk [vmem:[%s295_s10 + $0x28] sm:$0xff] %vm554_vm2, %v549_v21  ;;  %v580_v22 = vpop.xlane.xlu1 %579 }
 0x198   : > { %591 = vst.msk [vmem:[%s300_s13 + $0x20] sm:$0xff] %vm554_vm2, %v580_v22 }
 0x19a   : > { %v578_v23 = vpop.xlane.xlu0 %577 }
 0x19b   : > { %590 = vst.msk [vmem:[%s300_s13 + $0x18] sm:$0xff] %vm554_vm2, %v578_v23  ;;  %v541_v24 = vpop.xlane.xlu1 %540 }
 0x19c   : > { %556 = vst.msk [vmem:[%s295_s10 + $0x8] sm:$0xff] %vm554_vm2, %v541_v24 }
 0x19e   : > { %v574_v25 = vpop.xlane.xlu0 %573 }
 0x19f   : > { %588 = vst.msk [vmem:[%s300_s13 + $0x8] sm:$0xff] %vm554_vm2, %v574_v25  ;;  %v584_v26 = vpop.xlane.xlu1 %583 }
 0x1a0   : > { %593 = vst.msk [vmem:[%s300_s13 + $0x30] sm:$0xff] %vm554_vm2, %v584_v26 }
 0x1a2   : > { %v582_v27 = vpop.xlane.xlu0 %581 }
 0x1a3   : > { %592 = vst.msk [vmem:[%s300_s13 + $0x28] sm:$0xff] %vm554_vm2, %v582_v27  ;;  %611 = sbr.rel (!%p1029_p5) target bundleno = 424 (0x1a8), region = 77 }
 0x1a6   : > { %v586_v28 = vpop.xlane.xlu0 %585 }
 0x1a7   : > { %594 = vst.msk [vmem:[%s300_s13 + $0x38] sm:$0xff] %vm554_vm2, %v586_v28 }
 0x1a8 PF: > { %p15_p11 = scmp.ge.s32.totalorder %s1017_s26, 5   ;;  %s1171_s23 = smov %s953_s24 }
 0x1a9   : > { %s1172_s24 = smov %s1027_s29  ;;  %s1173_s25 = smov %s1017_s26 }
 0x1aa   :  { %17 = sbr.rel (!%p15_p11) target bundleno = 4 (0x4), region = 173 }

</bundles_post_ra>
